<compile_context>
chip_gen: v6e
topology: v6e:2x2x1
jax: 0.10.0
libtpu: 0.0.40
codegen_flags: <defaults>
</compile_context>

<pallas_src>
import functools

import jax
import jax.numpy as jnp
from jax.experimental import pallas as pl
from jax.experimental.pallas import tpu as pltpu


# ----------------------------------------------------------------------------
# Host-side (trace-time) weight preparation: conv -> dense matrix, flatten fold
# ----------------------------------------------------------------------------
def _conv_to_matrix(w_conv, H, W):
    """Dense matrix B (Cin*H*W, Cout*OH*OW) s.t. for NCHW-flat activations a (M, Cin*H*W),
    (a @ B) is the NCHW-flat VALID / stride-1 conv output."""
    Cout, Cin, kh, kw = w_conv.shape
    OH, OW = H - kh + 1, W - kw + 1
    co, ci, dh, dw, oh, ow = jnp.meshgrid(
        jnp.arange(Cout), jnp.arange(Cin), jnp.arange(kh), jnp.arange(kw),
        jnp.arange(OH), jnp.arange(OW), indexing="ij")
    rows = (ci * H * W + (oh + dh) * W + (ow + dw)).reshape(-1)
    cols = (co * OH * OW + oh * OW + ow).reshape(-1)
    vals = w_conv.astype(jnp.float32)[co, ci, dh, dw].reshape(-1)
    # .add (not .set): robust to any (row, col) collisions if stride/kernel configs change.
    return (jnp.zeros((Cin * H * W, Cout * OH * OW), jnp.float32)
            .at[rows, cols].add(vals))


# ----------------------------------------------------------------------------
# Fused Pallas kernel: one grid step == TB batch samples, everything in VMEM/vregs
# ----------------------------------------------------------------------------
def _cond_encoder_kernel(*refs, num_conv_layers):
    L = num_conv_layers
    v_ref, x_ref, bv_ref, bx_ref, b1_ref = refs[:5]
    conv_refs = refs[5:5 + 2 * (L - 1)]                       # (Bmat, bias_row) per layer
    w3_ref, b3_ref, o_ref = refs[5 + 2 * (L - 1): 8 + 2 * (L - 1)]

    # Conv layer 1: v-broadcast + channel-concat are pre-folded into Bv / Bx.
    a = jnp.dot(x_ref[...], bx_ref[...], preferred_element_type=jnp.float32)
    a = a + jnp.dot(v_ref[...], bv_ref[...], preferred_element_type=jnp.float32)
    a = jnp.maximum(a + b1_ref[...], 0.0)

    # Remaining conv layers: one dense (TB, K)@(K, N) matmul + bias + ReLU each.
    for l in range(L - 1):
        a = jnp.dot(a, conv_refs[2 * l][...], preferred_element_type=jnp.float32)
        a = jnp.maximum(a + conv_refs[2 * l + 1][...], 0.0)

    # Linear head (activation layout == NCHW flatten, weight lane-padded to 128 on host).
    o_ref[...] = (jnp.dot(a, w3_ref[...], preferred_element_type=jnp.float32)
                  + b3_ref[...]).astype(o_ref.dtype)


# ----------------------------------------------------------------------------
# ConditionalEncoder forward
# ----------------------------------------------------------------------------
def conditional_encoder_forward(x, v, params, *, kernel_size=5, stride=1, block_batch=8):
    """x: (N, C_img, H, W) NCHW, v: (N, n_cond) -> (N, out_size)."""
    assert stride == 1, "dense conv-matrix path assumes stride=1 (module default)"
    N, C_img, H, W = x.shape
    n_cond = v.shape[1]
    k = kernel_size
    HW = H * W

    conv_ws = [wc for (wc, _) in params["convs"]]
    conv_bs = [bc for (_, bc) in params["convs"]]
    L = len(conv_ws)
    chans = [C_img + n_cond] + [int(wc.shape[0]) for wc in conv_ws]
    Hs, Ws = [H], [W]
    for _ in range(L):
        Hs.append(Hs[-1] - k + 1)
        Ws.append(Ws[-1] - k + 1)

    # ---- static weight-side prep (tiny, trace-time only) ----
    mats = [_conv_to_matrix(conv_ws[l], Hs[l], Ws[l]) for l in range(L)]
    brows = [jnp.repeat(conv_bs[l].astype(jnp.float32), Hs[l + 1] * Ws[l + 1]).reshape(1, -1)
             for l in range(L)]

    # Split layer-1 matrix into the v part (broadcast over HxW folded = row-sum) and x part.
    n_cond_pad = max(8, -(-n_cond // 8) * 8)
    bv = mats[0][:n_cond * HW].reshape(n_cond, HW, -1).sum(axis=1)
    bv = jnp.zeros((n_cond_pad, bv.shape[1]), jnp.float32).at[:n_cond].set(bv)
    bx = mats[0][n_cond * HW:]                                  # (C_img*H*W, C1*OH1*OW1)

    lin_w, lin_b = params["linear"]                             # (out_size, n_conv_out)
    out_size = int(lin_w.shape[0])
    out_pad = -(-out_size // 128) * 128                         # lane-dense output store
    n_conv_out = chans[-1] * Hs[-1] * Ws[-1]
    w3 = (jnp.zeros((n_conv_out, out_pad), jnp.float32)
          .at[:, :out_size].set(lin_w.astype(jnp.float32).T))
    b3 = jnp.zeros((1, out_pad), jnp.float32).at[0, :out_size].set(lin_b.astype(jnp.float32))

    # ---- batch the grid: TB samples per step ----
    TB = block_batch
    Npad = -(-N // TB) * TB
    vpad = (jnp.zeros((Npad, n_cond_pad), jnp.float32)
            .at[:N, :n_cond].set(v.astype(jnp.float32)))
    xflat = (jnp.zeros((Npad, C_img * HW), jnp.float32)
             .at[:N].set(x.reshape(N, C_img * HW).astype(jnp.float32)))   # contiguous NCHW rows

    kernel = functools.partial(_cond_encoder_kernel, num_conv_layers=L)

    in_specs = [
        pl.BlockSpec((TB, n_cond_pad), lambda n: (n, 0)),       # v (TB samples)
        pl.BlockSpec((TB, C_img * HW), lambda n: (n, 0)),       # x flat (TB samples)
        pl.BlockSpec(bv.shape, lambda n: (0, 0)),               # layer-1 v weights
        pl.BlockSpec(bx.shape, lambda n: (0, 0)),               # layer-1 x weights
        pl.BlockSpec(brows[0].shape, lambda n: (0, 0)),         # layer-1 bias row
    ]
    operands = [vpad, xflat, bv, bx, brows[0]]
    for l in range(1, L):
        in_specs.append(pl.BlockSpec(mats[l].shape, lambda n: (0, 0)))
        in_specs.append(pl.BlockSpec(brows[l].shape, lambda n: (0, 0)))
        operands += [mats[l], brows[l]]
    in_specs += [pl.BlockSpec(w3.shape, lambda n: (0, 0)),
                 pl.BlockSpec(b3.shape, lambda n: (0, 0))]
    operands += [w3, b3]

    out = pl.pallas_call(
        kernel,
        out_shape=jax.ShapeDtypeStruct((Npad, out_pad), jnp.float32),
        grid=(Npad // TB,),
        in_specs=in_specs,
        out_specs=pl.BlockSpec((TB, out_pad), lambda n: (n, 0)),
        compiler_params=pltpu.CompilerParams(
            dimension_semantics=("parallel",)),     # 2x on v7x megacore when grid >= 2 steps
    )(*operands)
    return out[:N, :out_size]


# ----------------------------------------------------------------------------
# Pure-JAX reference (for correctness check)
# ----------------------------------------------------------------------------
def reference_forward(x, v, params, *, kernel_size=5, stride=1):
    N, C, H, W = x.shape
    n_cond = v.shape[1]
    v_img = jnp.broadcast_to(v[:, :, None, None].astype(jnp.float32), (N, n_cond, H, W))
    out = jnp.concatenate([v_img, x.astype(jnp.float32)], axis=1)
    for (w_conv, b_conv) in params["convs"]:
        out = jax.lax.conv_general_dilated(
            out, w_conv, window_strides=(stride, stride), padding="VALID",
            dimension_numbers=("NCHW", "OIHW", "NCHW"))
        out = jnp.maximum(out + b_conv[None, :, None, None], 0.0)
    flat = out.reshape(N, -1)
    lin_w, lin_b = params["linear"]
    return flat @ lin_w.T + lin_b


# ----------------------------------------------------------------------------
# Main
# ----------------------------------------------------------------------------
if __name__ == "__main__":
    # Module config: image_shape = (1, 16, 16), n_cond = 3 -> conv input channels = 4,
    # conv_channels = [4, 8], kernel_sizes = 5, strides = 1, out_size = 10.
    n_cond = 3
    image_shape = (1, 16, 16)
    conv_channels = [4, 8]
    kernel_size = 5
    stride = 1
    out_size = 10
    batch = 16           # 2 grid steps at TB=8 -> both v7x TensorCores engaged

    chans = [image_shape[0] + n_cond] + conv_channels          # [4, 4, 8]

    key = jax.random.PRNGKey(0)
    keys = jax.random.split(key, 2 + 2 * len(conv_channels) + 2)
    kx, kv = keys[0], keys[1]

    x = jax.random.normal(kx, (batch,) + image_shape, dtype=jnp.float32)
    v = jax.random.normal(kv, (batch, n_cond), dtype=jnp.float32)

    # Deterministic synthetic parameters
    convs = []
    ki = 2
    for cin, cout in zip(chans[:-1], chans[1:]):
        w = 0.1 * jax.random.normal(keys[ki], (cout, cin, kernel_size, kernel_size),
                                    dtype=jnp.float32)
        b = 0.1 * jax.random.normal(keys[ki + 1], (cout,), dtype=jnp.float32)
        convs.append((w, b))
        ki += 2

    # spatial size after the conv stack
    sh, sw = image_shape[1], image_shape[2]
    for _ in conv_channels:
        sh = (sh - kernel_size) // stride + 1
        sw = (sw - kernel_size) // stride + 1
    n_conv_out = chans[-1] * sh * sw                            # 8 * 8 * 8 = 512

    lin_w = 0.05 * jax.random.normal(keys[ki], (out_size, n_conv_out), dtype=jnp.float32)
    lin_b = 0.05 * jax.random.normal(keys[ki + 1], (out_size,), dtype=jnp.float32)

    params = {"convs": convs, "linear": (lin_w, lin_b)}

    fwd = jax.jit(functools.partial(conditional_encoder_forward,
                                    kernel_size=kernel_size, stride=stride, block_batch=8))
    out = jax.block_until_ready(fwd(x, v, params))
    assert out.shape == (batch, out_size), out.shape

    ref = jax.block_until_ready(
        reference_forward(x, v, params, kernel_size=kernel_size, stride=stride))
    assert jnp.allclose(out, ref, rtol=1e-4, atol=1e-4), \
        float(jnp.max(jnp.abs(out - ref)))

    print("KERNEL_OK")
</pallas_src>

<mosaic_0001>
module attributes {stable_mosaic.version = 11 : i64} {
  func.func private @main(%arg0: i32) attributes {dimension_semantics = [#tpu.dimension_semantics<core_parallel>], iteration_bounds = array<i64: 2>, tpu.core_type = #tpu.core_type<sc_scalar_subcore>, window_params = []} {
    return
  }
}

module attributes {stable_mosaic.version = 11 : i64} {
  func.func private @main(%arg0: i32) attributes {dimension_semantics = [#tpu.dimension_semantics<core_parallel>], iteration_bounds = array<i64: 2>, tpu.core_type = #tpu.core_type<sc_scalar_subcore>, window_params = []} {
    return
  }
}

module attributes {stable_mosaic.version = 11 : i64} {
  func.func @_cond_encoder_kernel(%arg0: i32, %arg1: memref<8x8xf32, #tpu.memory_space<vmem>>, %arg2: memref<8x256xf32, #tpu.memory_space<vmem>>, %arg3: memref<8x576xf32, #tpu.memory_space<vmem>>, %arg4: memref<256x576xf32, #tpu.memory_space<vmem>>, %arg5: memref<1x576xf32, #tpu.memory_space<vmem>>, %arg6: memref<576x512xf32, #tpu.memory_space<vmem>>, %arg7: memref<1x512xf32, #tpu.memory_space<vmem>>, %arg8: memref<512x128xf32, #tpu.memory_space<vmem>>, %arg9: memref<1x128xf32, #tpu.memory_space<vmem>>, %arg10: memref<8x128xf32, #tpu.memory_space<vmem>>) attributes {dimension_semantics = [#tpu.dimension_semantics<parallel>], iteration_bounds = array<i64: 2>, scalar_prefetch = 0 : i64, scratch_operands = 0 : i64, tpu.core_type = #tpu.core_type<tc>, window_params = [{transform_indices = @transform_0, window_bounds = array<i64: 8, 8>}, {transform_indices = @transform_1, window_bounds = array<i64: 8, 256>}, {pipeline_mode = #tpu.pipeline_mode<synchronous>, transform_indices = @transform_2, window_bounds = array<i64: 8, 576>}, {pipeline_mode = #tpu.pipeline_mode<synchronous>, transform_indices = @transform_3, window_bounds = array<i64: 256, 576>}, {pipeline_mode = #tpu.pipeline_mode<synchronous>, transform_indices = @transform_4, window_bounds = array<i64: 1, 576>}, {pipeline_mode = #tpu.pipeline_mode<synchronous>, transform_indices = @transform_5, window_bounds = array<i64: 576, 512>}, {pipeline_mode = #tpu.pipeline_mode<synchronous>, transform_indices = @transform_6, window_bounds = array<i64: 1, 512>}, {pipeline_mode = #tpu.pipeline_mode<synchronous>, transform_indices = @transform_7, window_bounds = array<i64: 512, 128>}, {pipeline_mode = #tpu.pipeline_mode<synchronous>, transform_indices = @transform_8, window_bounds = array<i64: 1, 128>}, {transform_indices = @transform_9, window_bounds = array<i64: 8, 128>}]} {
    %c0 = arith.constant 0 : index
    %c0_0 = arith.constant 0 : index
    %0 = vector.load %arg2[%c0, %c0_0] : memref<8x256xf32, #tpu.memory_space<vmem>>, vector<8x256xf32>
    %c0_1 = arith.constant 0 : index
    %c0_2 = arith.constant 0 : index
    %1 = vector.load %arg4[%c0_1, %c0_2] : memref<256x576xf32, #tpu.memory_space<vmem>>, vector<256x576xf32>
    %cst = arith.constant dense<0.000000e+00> : vector<8x576xf32>
    %2 = tpu.matmul %0, %1, %cst {dimension_numbers = #tpu.dot_dimension_numbers<[1], [0], [0], [1], [0, 0, 1, 1], [], []>} : vector<8x256xf32>, vector<256x576xf32>, vector<8x576xf32> -> vector<8x576xf32>
    %c0_3 = arith.constant 0 : index
    %c0_4 = arith.constant 0 : index
    %3 = vector.load %arg1[%c0_3, %c0_4] : memref<8x8xf32, #tpu.memory_space<vmem>>, vector<8x8xf32>
    %c0_5 = arith.constant 0 : index
    %c0_6 = arith.constant 0 : index
    %4 = vector.load %arg3[%c0_5, %c0_6] : memref<8x576xf32, #tpu.memory_space<vmem>>, vector<8x576xf32>
    %cst_7 = arith.constant dense<0.000000e+00> : vector<8x576xf32>
    %5 = tpu.matmul %3, %4, %cst_7 {dimension_numbers = #tpu.dot_dimension_numbers<[1], [0], [0], [1], [0, 0, 1, 1], [], []>} : vector<8x8xf32>, vector<8x576xf32>, vector<8x576xf32> -> vector<8x576xf32>
    %6 = arith.addf %2, %5 : vector<8x576xf32>
    %c0_8 = arith.constant 0 : index
    %c0_9 = arith.constant 0 : index
    %7 = vector.load %arg5[%c0_8, %c0_9] : memref<1x576xf32, #tpu.memory_space<vmem>>, vector<1x576xf32>
    %8 = vector.broadcast %7 : vector<1x576xf32> to vector<8x576xf32>
    %9 = arith.addf %6, %8 : vector<8x576xf32>
    %cst_10 = arith.constant 0.000000e+00 : f32
    %10 = vector.broadcast %cst_10 : f32 to vector<8x576xf32>
    %11 = arith.maximumf %9, %10 : vector<8x576xf32>
    %c0_11 = arith.constant 0 : index
    %c0_12 = arith.constant 0 : index
    %12 = vector.load %arg6[%c0_11, %c0_12] : memref<576x512xf32, #tpu.memory_space<vmem>>, vector<576x512xf32>
    %cst_13 = arith.constant dense<0.000000e+00> : vector<8x512xf32>
    %13 = tpu.matmul %11, %12, %cst_13 {dimension_numbers = #tpu.dot_dimension_numbers<[1], [0], [0], [1], [0, 0, 1, 1], [], []>} : vector<8x576xf32>, vector<576x512xf32>, vector<8x512xf32> -> vector<8x512xf32>
    %c0_14 = arith.constant 0 : index
    %c0_15 = arith.constant 0 : index
    %14 = vector.load %arg7[%c0_14, %c0_15] : memref<1x512xf32, #tpu.memory_space<vmem>>, vector<1x512xf32>
    %15 = vector.broadcast %14 : vector<1x512xf32> to vector<8x512xf32>
    %16 = arith.addf %13, %15 : vector<8x512xf32>
    %cst_16 = arith.constant 0.000000e+00 : f32
    %17 = vector.broadcast %cst_16 : f32 to vector<8x512xf32>
    %18 = arith.maximumf %16, %17 : vector<8x512xf32>
    %c0_17 = arith.constant 0 : index
    %c0_18 = arith.constant 0 : index
    %19 = vector.load %arg8[%c0_17, %c0_18] : memref<512x128xf32, #tpu.memory_space<vmem>>, vector<512x128xf32>
    %cst_19 = arith.constant dense<0.000000e+00> : vector<8x128xf32>
    %20 = tpu.matmul %18, %19, %cst_19 {dimension_numbers = #tpu.dot_dimension_numbers<[1], [0], [0], [1], [0, 0, 1, 1], [], []>} : vector<8x512xf32>, vector<512x128xf32>, vector<8x128xf32> -> vector<8x128xf32>
    %c0_20 = arith.constant 0 : index
    %c0_21 = arith.constant 0 : index
    %21 = vector.load %arg9[%c0_20, %c0_21] : memref<1x128xf32, #tpu.memory_space<vmem>>, vector<1x128xf32>
    %22 = vector.broadcast %21 : vector<1x128xf32> to vector<8x128xf32>
    %23 = arith.addf %20, %22 : vector<8x128xf32>
    %c0_22 = arith.constant 0 : index
    %c0_23 = arith.constant 0 : index
    %24 = vector.load %arg10[%c0_22, %c0_23] : memref<8x128xf32, #tpu.memory_space<vmem>>, vector<8x128xf32>
    tpu.vector_store %arg10[%c0_22, %c0_23], %23 {strides = array<i32>} : memref<8x128xf32, #tpu.memory_space<vmem>>, vector<8x128xf32>,
    return
  }
  func.func @transform_0(%arg0: i32) -> (i32, i32) {
    %c0_i32 = arith.constant 0 : i32
    %c0_i32_0 = arith.constant 0 : i32
    return %arg0, %c0_i32 : i32, i32
  }
  func.func @transform_1(%arg0: i32) -> (i32, i32) {
    %c0_i32 = arith.constant 0 : i32
    %c0_i32_0 = arith.constant 0 : i32
    return %arg0, %c0_i32 : i32, i32
  }
  func.func @transform_2(%arg0: i32) -> (i32, i32) {
    %c0_i32 = arith.constant 0 : i32
    %c0_i32_0 = arith.constant 0 : i32
    %c0_i32_1 = arith.constant 0 : i32
    return %c0_i32, %c0_i32_0 : i32, i32
  }
  func.func @transform_3(%arg0: i32) -> (i32, i32) {
    %c0_i32 = arith.constant 0 : i32
    %c0_i32_0 = arith.constant 0 : i32
    %c0_i32_1 = arith.constant 0 : i32
    return %c0_i32, %c0_i32_0 : i32, i32
  }
  func.func @transform_4(%arg0: i32) -> (i32, i32) {
    %c0_i32 = arith.constant 0 : i32
    %c0_i32_0 = arith.constant 0 : i32
    %c0_i32_1 = arith.constant 0 : i32
    return %c0_i32, %c0_i32_0 : i32, i32
  }
  func.func @transform_5(%arg0: i32) -> (i32, i32) {
    %c0_i32 = arith.constant 0 : i32
    %c0_i32_0 = arith.constant 0 : i32
    %c0_i32_1 = arith.constant 0 : i32
    return %c0_i32, %c0_i32_0 : i32, i32
  }
  func.func @transform_6(%arg0: i32) -> (i32, i32) {
    %c0_i32 = arith.constant 0 : i32
    %c0_i32_0 = arith.constant 0 : i32
    %c0_i32_1 = arith.constant 0 : i32
    return %c0_i32, %c0_i32_0 : i32, i32
  }
  func.func @transform_7(%arg0: i32) -> (i32, i32) {
    %c0_i32 = arith.constant 0 : i32
    %c0_i32_0 = arith.constant 0 : i32
    %c0_i32_1 = arith.constant 0 : i32
    return %c0_i32, %c0_i32_0 : i32, i32
  }
  func.func @transform_8(%arg0: i32) -> (i32, i32) {
    %c0_i32 = arith.constant 0 : i32
    %c0_i32_0 = arith.constant 0 : i32
    %c0_i32_1 = arith.constant 0 : i32
    return %c0_i32, %c0_i32_0 : i32, i32
  }
  func.func @transform_9(%arg0: i32) -> (i32, i32) {
    %c0_i32 = arith.constant 0 : i32
    %c0_i32_0 = arith.constant 0 : i32
    return %arg0, %c0_i32 : i32, i32
  }
}

</mosaic_0001>

<bundles_post_ra>
// kernel: conditional_encoder_forward.1
= control target key start
LH: loop header
LB: loop body
LE: loop exit
PB: predicated region body
PF: predicated region fallthrough
CT: control target
= control target key end

     0   :  { %14 = vsyncpa [#allocation3], 0  ;;  %s4040_s0 = inlined_call_operand.vmem [shape: f32[16,8], index: 0, kind: input, shape index: {}]   ;;  %s4041_s1 = inlined_call_operand.vmem [shape: f32[16,256], index: 1, kind: input, shape index: {}]   ;;  %s4042_s2 = inlined_call_operand.vmem [shape: f32[8,576], index: 2, kind: input, shape index: {}]   ;;  %s4043_s3 = inlined_call_operand.vmem [shape: f32[256,576], index: 3, kind: input, shape index: {}]   ;;  %s4044_s4 = inlined_call_operand.vmem [shape: f32[1,576], index: 4, kind: input, shape index: {}]   ;;  %s4045_s5 = inlined_call_operand.vmem [shape: f32[576,512], index: 5, kind: input, shape index: {}]   ;;  %s4046_s6 = inlined_call_operand.vmem [shape: f32[1,512], index: 6, kind: input, shape index: {}]   ;;  %s4047_s7 = inlined_call_operand.vmem [shape: f32[512,128], index: 7, kind: input, shape index: {}]   ;;  %s4048_s8 = inlined_call_operand.vmem [shape: f32[1,128], index: 8, kind: input, shape index: {}]   ;;  %s4049_s9 = inlined_call_operand.hbm [shape: f32[16,128], index: 9, kind: output, shape index: {}]  }
   0x1   :  { %16 = vsyncpa [#allocation3 + $0x1], 0  ;;  %s2309_s30 = smov 0   ;;  %s2311_s10 = smov 0  }
   0x2   :  { %s2313_s11 = smov 0   ;;  %s2315_s12 = smov 0  }
   0x3 LB: > { %s2330_s13 = sadd.s32 4294967295, %s2254_s12   ;;  %s2022_s14 = sadd.s32 4294967294, %s2254_s12   ;;  %s2254_s12 = sphi %s2315_s12, %s4055_s12   ;;  %s2250_s11 = sphi %s2313_s11, %s4054_s11   ;;  %s2246_s10 = sphi %s2311_s10, %s4053_s10   ;;  %s2242_s30 = sphi %s2309_s30, %s4052_s30  }
   0x4   : > { %s2334_s15 = sadd.s32 1, %s2254_s12   ;;  %s228_s16 = sadd.s32 1, %s2250_s11 }
   0x5   : > { %s225_s17 = ssub.s32 %s2254_s12, %s2334_s15  ;;  %p238_p0 = scmp.ne.s32.totalorder %s2250_s11, %s2246_s10 }
   0x6   : > { %p226_p1 = scmp.eq.s32.totalorder %s225_s17, 0  ;;  %p239_p2 = scmp.eq.s32.totalorder %s2330_s13, 1 }
   0x7   : > { %p244_p3 = scmp.ne.s32.totalorder %s2246_s10, %s2242_s30  ;;  %p245_p4 = scmp.eq.s32.totalorder %s2022_s14, 1 }
   0x8   : > { %s2345_s18 = scalar_select %p226_p1, %s2250_s11, %s228_s16  }
   0x9   : > { %p2347_p5 = por %p239_p2, %p238_p0  ;;  %p2351_p6 = por %p245_p4, %p244_p3 }
   0xa   : > { %p2025_p7 = scmp.ge.s32.totalorder %s2254_s12, 1  ;;  %p299_p8 = scmp.lt.s32.totalorder %s2254_s12, 3 }
   0xc   : > { %p300_p9 = pnand %p2025_p7, %p299_p8 }
   0xd   : > { %p339_p10 = scmp.lt.s32.totalorder (!%p300_p9), %s2330_s13, 1  ;;  %s336_s24 = sand.u32 (!%p300_p9), 1, %s2246_s10  }
   0xe   : > { %303 = sbr.rel (%p300_p9) target bundleno = 817 (0x331), region = 56  ;;  %s2037_s26 = sshll.u32 (!%p300_p9), %s2330_s13, 7 }
   0xf   : > { %s1949_s14 = scalar_lea.hbm (!%p300_p9), %s4049_s9, %s2037_s26  ;;  %s1938_s21 = scalar_lea.sflag (!%p300_p9), [#allocation3], %s336_s24 }
  0x10   : > { %s2258_s25 = smov (!%p300_p9), [#allocation2]  }
  0x13   : > { %v514_v0 = vld [vmem:[%s4042_s2 + $0x18] sm:$0xff]  ;;  %v512_v1 = vld [vmem:[%s4042_s2 + $0x8] sm:$0xff]  ;;  %v513_v2 = vld [vmem:[%s4042_s2 + $0x10] sm:$0xff]  ;;  %s2374_s16 = scalar_select %p339_p10, %s2330_s13, 1  ;;  %v2256_v5 = vmov 0.0   ;;  %vm516_vm0 = vcmask 64512  }
  0x14   : > { %621 = vmatprep.subr.mxu1 %v514_v0  ;;  %550 = vmatprep.subr.mxu0 %v512_v1  ;;  %v511_v3 = vld [vmem:[%s4042_s2] sm:$0xff]  ;;  %v425_v6 = vld [vmem:[%s4043_s3 + $0x258] sm:$0xff]  ;;  %v420_v10 = vld [vmem:[%s4043_s3 + $0x230] sm:$0xff]  ;;  %vm2257_vm1 = vmmov 0   ;;  %vm1291_vm2 = vcmask 523264  }
  0x15   : > { %v426_v4 = vld [vmem:[%s4043_s3 + $0x260] sm:$0xff]  ;;  %622 = vmatpush1.msra.mxu1 %v513_v2  ;;  %551 = vmatpush1.msra.mxu0 %v511_v3  ;;  %s2027_s17 = sshll.u32 %s2374_s16, 3  ;;  %v421_v9 = vld [vmem:[%s4043_s3 + $0x238] sm:$0xff]  ;;  %v428_v11 = vld [vmem:[%s4043_s3 + $0x270] sm:$0xff]  ;;  %s2040_s28 = sshll.u32 %s2374_s16, 4 }
  0x16   : > { %584 = vmatprep.mubr.f32.mxu0 %v2256_v5  ;;  %655 = vmatprep.mubr.f32.mxu1 %v2256_v5  ;;  %s342_s23 = scalar_lea.vmem %s4040_s0, %s2027_s17  ;;  %v515_v7 = vld [vmem:[%s4042_s2 + $0x20] sm:$0xff]  ;;  %v416_v12 = vld [vmem:[%s4043_s3 + $0x210] sm:$0xff]  ;;  %v415_v13 = vld [vmem:[%s4043_s3 + $0x208] sm:$0xff]  ;;  %s347_s17 = scalar_lea.vmem %s4041_s1, %s2040_s28 }
  0x17   : > { %732 = vmatprep.subr.mxu1 %v426_v4  ;;  %2148 = vmatprep.subr.mxu0 %v2256_v5  ;;  %v510_v8 = vld [vmem:[%s342_s23] sm:$0xff]  ;;  %v427_v14 = vld [vmem:[%s4043_s3 + $0x268] sm:$0xff]  ;;  %v405_v21 = vld [vmem:[%s4043_s3 + $0x1b8] sm:$0xff]  ;;  %s2026_s23 = sshll.u32 %s336_s24, 3  ;;  %s2198_s16 = sshll.u32 %s2258_s25, 4  ;;  %s2199_s16 = int_to_ptr.vmem [resolvable:$false] %s2198_s16 }
  0x18   : > { %2030 = vmatmul.mubr.msk.f32.vlgmr.msra.gmra.mxu0 %vm516_vm0, %v510_v8  ;;  %2031 = vmatmul.mubr.msk.f32.vlgmr.msra.gmra.mxu1 %vm516_vm0, %v510_v8  ;;  %v411_v15 = vld [vmem:[%s4043_s3 + $0x1e8] sm:$0xff]  ;;  %v410_v17 = vld [vmem:[%s4043_s3 + $0x1e0] sm:$0xff]  ;;  %v417_v22 = vld [vmem:[%s4043_s3 + $0x218] sm:$0xff]  ;;  %s338_s27 = scalar_lea.vmem [#allocation2], %s2026_s23  ;;  %s2200_s13 = scalar_lea.vmem %s2199_s16, 256 }
  0x19   : > { %733 = vmatpush1.msra.mxu1 %v425_v6  ;;  %2149 = vmatpush3.msra.mxu0 %v515_v7  ;;  %v423_v16 = vld [vmem:[%s4043_s3 + $0x248] sm:$0xff]  ;;  %v422_v18 = vld [vmem:[%s4043_s3 + $0x240] sm:$0xff]  ;;  %v401_v23 = vld [vmem:[%s4043_s3 + $0x198] sm:$0xff]  ;;  %s1951_s29 = sshll.u32 %s338_s27, 4  ;;  %s1952_s29 = int_to_ptr.vmem [resolvable:$true] %s1951_s29 }
  0x1a   : > { %734 = vmatprep.subr.mxu1 %v421_v9  ;;  %2150 = vmatprep.mubr.msk.f32.mxu0 %vm2257_vm1, %v2256_v5  ;;  %v406_v19 = vld [vmem:[%s4043_s3 + $0x1c0] sm:$0xff]  ;;  %v413_v24 = vld [vmem:[%s4043_s3 + $0x1f8] sm:$0xff]  ;;  %v400_v25 = vld [vmem:[%s4043_s3 + $0x190] sm:$0xff]  ;;  %s2194_s22 = scalar_lea.vmem %s1952_s29, 128  ;;  %p2201_p0 = scmp.lt.s32.totalorder %s1952_s29, %s2199_s16 }
  0x1b   : > { %735 = vmatpush1.msra.mxu1 %v420_v10  ;;  %803 = vmatprep.subr.mxu0 %v428_v11  ;;  %v418_v20 = vld [vmem:[%s4043_s3 + $0x220] sm:$0xff]  ;;  %v412_v26 = vld [vmem:[%s4043_s3 + $0x1f0] sm:$0xff]  ;;  %v395_v29 = vld [vmem:[%s4043_s3 + $0x168] sm:$0xff]  ;;  %p2195_p11 = scmp.ne.s32.totalorder %s1952_s29, %s2194_s22  ;;  %p2202_p1 = scmp.lt.s32.totalorder %s2200_s13, %s2194_s22 }
  0x1c   : > { %736 = vmatprep.subr.mxu1 %v416_v12  ;;  %2151 = vmatmul.mubr.msk.f32.vlgmr.msra.gmra.mxu0 %vm516_vm0, %v510_v8  ;;  %v396_v27 = vld [vmem:[%s4043_s3 + $0x170] sm:$0xff]  ;;  %v407_v30 = vld [vmem:[%s4043_s3 + $0x1c8] sm:$0xff]  ;;  %v390_v33 = vld [vmem:[%s4043_s3 + $0x140] sm:$0xff] }
  0x1d   : > { %737 = vmatpush1.msra.mxu1 %v415_v13  ;;  %804 = vmatpush1.msra.mxu0 %v427_v14  ;;  %v408_v28 = vld [vmem:[%s4043_s3 + $0x1d0] sm:$0xff]  ;;  %v391_v31 = vld [vmem:[%s4043_s3 + $0x148] sm:$0xff]  ;;  %v402_v34 = vld [vmem:[%s4043_s3 + $0x1a0] sm:$0xff]  ;;  %p2196_p12 = pnand %p2195_p11, %p2347_p5  ;;  %p2203_p2 = por %p2202_p1, %p2201_p0 }
  0x1e   : > { %738 = vmatprep.subr.mxu1 %v411_v15  ;;  %805 = vmatprep.subr.mxu0 %v423_v16  ;;  %v403_v32 = vld [vmem:[%s4043_s3 + $0x1a8] sm:$0xff]  ;;  %v386_v35 = vld [vmem:[%s4043_s3 + $0x120] sm:$0xff]  ;;  %v385_v37 = vld [vmem:[%s4043_s3 + $0x118] sm:$0xff] }
  0x1f   : > { %739 = vmatpush1.msra.mxu1 %v410_v17  ;;  %806 = vmatpush1.msra.mxu0 %v422_v18  ;;  %v398_v36 = vld [vmem:[%s4043_s3 + $0x180] sm:$0xff]  ;;  %v397_v38 = vld [vmem:[%s4043_s3 + $0x178] sm:$0xff]  ;;  %v380_v41 = vld [vmem:[%s4043_s3 + $0xf0] sm:$0xff]  ;;  %p2197_p13 = pneg %p2196_p12 }
  0x20   : > { %740 = vmatprep.subr.mxu1 %v406_v19  ;;  %807 = vmatprep.subr.mxu0 %v418_v20  ;;  %v381_v39 = vld [vmem:[%s4043_s3 + $0xf8] sm:$0xff]  ;;  %v392_v42 = vld [vmem:[%s4043_s3 + $0x150] sm:$0xff]  ;;  %v375_v45 = vld [vmem:[%s4043_s3 + $0xc8] sm:$0xff] }
  0x21   : > { %741 = vmatpush1.msra.mxu1 %v405_v21  ;;  %808 = vmatpush1.msra.mxu0 %v417_v22  ;;  %v393_v40 = vld [vmem:[%s4043_s3 + $0x158] sm:$0xff]  ;;  %v376_v43 = vld [vmem:[%s4043_s3 + $0xd0] sm:$0xff]  ;;  %v387_v46 = vld [vmem:[%s4043_s3 + $0x128] sm:$0xff]  ;;  %p2204_p3 = pnand %p2203_p2, %p2197_p13 }
  0x22   : > { %742 = vmatprep.subr.mxu1 %v401_v23  ;;  %809 = vmatprep.subr.mxu0 %v413_v24  ;;  %v388_v44 = vld [vmem:[%s4043_s3 + $0x130] sm:$0xff]  ;;  %v371_v47 = vld [vmem:[%s4043_s3 + $0xa8] sm:$0xff]  ;;  %v370_v49 = vld [vmem:[%s4043_s3 + $0xa0] sm:$0xff] }
  0x23   : > { %743 = vmatpush1.msra.mxu1 %v400_v25  ;;  %810 = vmatpush1.msra.mxu0 %v412_v26  ;;  %v383_v48 = vld [vmem:[%s4043_s3 + $0x108] sm:$0xff]  ;;  %v382_v50 = vld [vmem:[%s4043_s3 + $0x100] sm:$0xff]  ;;  %v365_v53 = vld [vmem:[%s4043_s3 + $0x78] sm:$0xff] }
  0x24   : > { %744 = vmatprep.subr.mxu1 %v396_v27  ;;  %811 = vmatprep.subr.mxu0 %v408_v28  ;;  %v366_v51 = vld [vmem:[%s4043_s3 + $0x80] sm:$0xff]  ;;  %v377_v54 = vld [vmem:[%s4043_s3 + $0xd8] sm:$0xff]  ;;  %v360_v57 = vld [vmem:[%s4043_s3 + $0x50] sm:$0xff] }
  0x25   : > { %745 = vmatpush1.msra.mxu1 %v395_v29  ;;  %812 = vmatpush1.msra.mxu0 %v407_v30  ;;  %v378_v52 = vld [vmem:[%s4043_s3 + $0xe0] sm:$0xff]  ;;  %v361_v55 = vld [vmem:[%s4043_s3 + $0x58] sm:$0xff]  ;;  %v372_v58 = vld [vmem:[%s4043_s3 + $0xb0] sm:$0xff] }
  0x26   : > { %746 = vmatprep.subr.mxu1 %v391_v31  ;;  %813 = vmatprep.subr.mxu0 %v403_v32  ;;  %v373_v56 = vld [vmem:[%s4043_s3 + $0xb8] sm:$0xff]  ;;  %v356_v59 = vld [vmem:[%s4043_s3 + $0x30] sm:$0xff]  ;;  %v355_v61 = vld [vmem:[%s4043_s3 + $0x28] sm:$0xff] }
  0x27   : > { %747 = vmatpush1.msra.mxu1 %v390_v33  ;;  %814 = vmatpush1.msra.mxu0 %v402_v34  ;;  %v368_v60 = vld [vmem:[%s4043_s3 + $0x90] sm:$0xff]  ;;  %v367_v62 = vld [vmem:[%s4043_s3 + $0x88] sm:$0xff]  ;;  %v350_v1 = vld [vmem:[%s4043_s3] sm:$0xff] }
  0x28   : > { %748 = vmatprep.subr.mxu1 %v386_v35  ;;  %815 = vmatprep.subr.mxu0 %v398_v36  ;;  %v351_v63 = vld [vmem:[%s4043_s3 + $0x8] sm:$0xff]  ;;  %v362_v2 = vld [vmem:[%s4043_s3 + $0x60] sm:$0xff]  ;;  %v505_v6 = vld [vmem:[%s4043_s3 + $0x4d8] sm:$0xff] }
  0x29   : > { %749 = vmatpush1.msra.mxu1 %v385_v37  ;;  %816 = vmatpush1.msra.mxu0 %v397_v38  ;;  %v363_v0 = vld [vmem:[%s4043_s3 + $0x68] sm:$0xff]  ;;  %v506_v3 = vld [vmem:[%s4043_s3 + $0x4e0] sm:$0xff]  ;;  %v357_v7 = vld [vmem:[%s4043_s3 + $0x38] sm:$0xff] }
  0x2a   : > { %750 = vmatprep.subr.mxu1 %v381_v39  ;;  %817 = vmatprep.subr.mxu0 %v393_v40  ;;  %v358_v4 = vld [vmem:[%s4043_s3 + $0x40] sm:$0xff]  ;;  %v501_v8 = vld [vmem:[%s4043_s3 + $0x4b8] sm:$0xff]  ;;  %v500_v10 = vld [vmem:[%s4043_s3 + $0x4b0] sm:$0xff] }
  0x2b   : > { %751 = vmatpush1.msra.mxu1 %v380_v41  ;;  %818 = vmatpush1.msra.mxu0 %v392_v42  ;;  %v353_v9 = vld [vmem:[%s4043_s3 + $0x18] sm:$0xff]  ;;  %v352_v11 = vld [vmem:[%s4043_s3 + $0x10] sm:$0xff]  ;;  %v495_v14 = vld [vmem:[%s4043_s3 + $0x488] sm:$0xff] }
  0x2c   : > { %752 = vmatprep.subr.mxu1 %v376_v43  ;;  %819 = vmatprep.subr.mxu0 %v388_v44  ;;  %v496_v12 = vld [vmem:[%s4043_s3 + $0x490] sm:$0xff]  ;;  %v507_v15 = vld [vmem:[%s4043_s3 + $0x4e8] sm:$0xff]  ;;  %v490_v18 = vld [vmem:[%s4043_s3 + $0x460] sm:$0xff] }
  0x2d   : > { %753 = vmatpush1.msra.mxu1 %v375_v45  ;;  %820 = vmatpush1.msra.mxu0 %v387_v46  ;;  %v508_v13 = vld [vmem:[%s4043_s3 + $0x4f0] sm:$0xff]  ;;  %v491_v16 = vld [vmem:[%s4043_s3 + $0x468] sm:$0xff]  ;;  %v502_v19 = vld [vmem:[%s4043_s3 + $0x4c0] sm:$0xff] }
  0x2e   : > { %754 = vmatprep.subr.mxu1 %v371_v47  ;;  %821 = vmatprep.subr.mxu0 %v383_v48  ;;  %v503_v17 = vld [vmem:[%s4043_s3 + $0x4c8] sm:$0xff]  ;;  %v486_v20 = vld [vmem:[%s4043_s3 + $0x440] sm:$0xff]  ;;  %v485_v22 = vld [vmem:[%s4043_s3 + $0x438] sm:$0xff] }
  0x2f   : > { %755 = vmatpush1.msra.mxu1 %v370_v49  ;;  %822 = vmatpush1.msra.mxu0 %v382_v50  ;;  %v498_v21 = vld [vmem:[%s4043_s3 + $0x4a0] sm:$0xff]  ;;  %v497_v23 = vld [vmem:[%s4043_s3 + $0x498] sm:$0xff]  ;;  %v480_v26 = vld [vmem:[%s4043_s3 + $0x410] sm:$0xff] }
  0x30   : > { %756 = vmatprep.subr.mxu1 %v366_v51  ;;  %823 = vmatprep.subr.mxu0 %v378_v52  ;;  %v481_v24 = vld [vmem:[%s4043_s3 + $0x418] sm:$0xff]  ;;  %v492_v27 = vld [vmem:[%s4043_s3 + $0x470] sm:$0xff]  ;;  %v475_v30 = vld [vmem:[%s4043_s3 + $0x3e8] sm:$0xff] }
  0x31   : > { %757 = vmatpush1.msra.mxu1 %v365_v53  ;;  %824 = vmatpush1.msra.mxu0 %v377_v54  ;;  %v493_v25 = vld [vmem:[%s4043_s3 + $0x478] sm:$0xff]  ;;  %v476_v28 = vld [vmem:[%s4043_s3 + $0x3f0] sm:$0xff]  ;;  %v487_v31 = vld [vmem:[%s4043_s3 + $0x448] sm:$0xff] }
  0x32   : > { %758 = vmatprep.subr.mxu1 %v361_v55  ;;  %825 = vmatprep.subr.mxu0 %v373_v56  ;;  %v488_v29 = vld [vmem:[%s4043_s3 + $0x450] sm:$0xff]  ;;  %v471_v32 = vld [vmem:[%s4043_s3 + $0x3c8] sm:$0xff]  ;;  %v470_v34 = vld [vmem:[%s4043_s3 + $0x3c0] sm:$0xff] }
  0x33   : > { %759 = vmatpush1.msra.mxu1 %v360_v57  ;;  %826 = vmatpush1.msra.mxu0 %v372_v58  ;;  %v483_v33 = vld [vmem:[%s4043_s3 + $0x428] sm:$0xff]  ;;  %v482_v35 = vld [vmem:[%s4043_s3 + $0x420] sm:$0xff]  ;;  %v465_v38 = vld [vmem:[%s4043_s3 + $0x398] sm:$0xff] }
  0x34   : > { %760 = vmatprep.subr.mxu1 %v356_v59  ;;  %827 = vmatprep.subr.mxu0 %v368_v60  ;;  %v466_v36 = vld [vmem:[%s4043_s3 + $0x3a0] sm:$0xff]  ;;  %v477_v39 = vld [vmem:[%s4043_s3 + $0x3f8] sm:$0xff]  ;;  %v460_v42 = vld [vmem:[%s4043_s3 + $0x370] sm:$0xff] }
  0x35   : > { %761 = vmatpush1.msra.mxu1 %v355_v61  ;;  %828 = vmatpush1.msra.mxu0 %v367_v62  ;;  %v478_v37 = vld [vmem:[%s4043_s3 + $0x400] sm:$0xff]  ;;  %v461_v40 = vld [vmem:[%s4043_s3 + $0x378] sm:$0xff]  ;;  %v472_v43 = vld [vmem:[%s4043_s3 + $0x3d0] sm:$0xff] }
  0x36   : > { %762 = vmatprep.subr.mxu1 %v351_v63  ;;  %829 = vmatprep.subr.mxu0 %v363_v0  ;;  %v473_v41 = vld [vmem:[%s4043_s3 + $0x3d8] sm:$0xff]  ;;  %v456_v44 = vld [vmem:[%s4043_s3 + $0x350] sm:$0xff]  ;;  %v455_v46 = vld [vmem:[%s4043_s3 + $0x348] sm:$0xff] }
  0x37   : > { %763 = vmatpush1.msra.mxu1 %v350_v1  ;;  %830 = vmatpush1.msra.mxu0 %v362_v2  ;;  %v468_v45 = vld [vmem:[%s4043_s3 + $0x3b0] sm:$0xff]  ;;  %v467_v47 = vld [vmem:[%s4043_s3 + $0x3a8] sm:$0xff]  ;;  %v450_v50 = vld [vmem:[%s4043_s3 + $0x320] sm:$0xff] }
  0x38   : > { %764 = vmatprep.subr.mxu1 %v506_v3  ;;  %831 = vmatprep.subr.mxu0 %v358_v4  ;;  %v451_v48 = vld [vmem:[%s4043_s3 + $0x328] sm:$0xff]  ;;  %v462_v51 = vld [vmem:[%s4043_s3 + $0x380] sm:$0xff]  ;;  %v445_v54 = vld [vmem:[%s4043_s3 + $0x2f8] sm:$0xff] }
  0x39   : > { %765 = vmatpush2.msra.mxu1 %v505_v6  ;;  %832 = vmatpush1.msra.mxu0 %v357_v7  ;;  %v463_v49 = vld [vmem:[%s4043_s3 + $0x388] sm:$0xff]  ;;  %v446_v52 = vld [vmem:[%s4043_s3 + $0x300] sm:$0xff]  ;;  %v457_v55 = vld [vmem:[%s4043_s3 + $0x358] sm:$0xff] }
  0x3a   : > { %766 = vmatprep.subr.mxu1 %v501_v8  ;;  %833 = vmatprep.subr.mxu0 %v353_v9  ;;  %v458_v53 = vld [vmem:[%s4043_s3 + $0x360] sm:$0xff]  ;;  %v441_v56 = vld [vmem:[%s4043_s3 + $0x2d8] sm:$0xff]  ;;  %v440_v58 = vld [vmem:[%s4043_s3 + $0x2d0] sm:$0xff] }
  0x3b   : > { %767 = vmatpush2.msra.mxu1 %v500_v10  ;;  %834 = vmatpush1.msra.mxu0 %v352_v11  ;;  %v453_v57 = vld [vmem:[%s4043_s3 + $0x338] sm:$0xff]  ;;  %v452_v59 = vld [vmem:[%s4043_s3 + $0x330] sm:$0xff]  ;;  %v435_v62 = vld [vmem:[%s4043_s3 + $0x2a8] sm:$0xff] }
  0x3c   : > { %768 = vmatprep.subr.mxu1 %v496_v12  ;;  %835 = vmatprep.subr.mxu0 %v508_v13  ;;  %v436_v60 = vld [vmem:[%s4043_s3 + $0x2b0] sm:$0xff]  ;;  %v447_v63 = vld [vmem:[%s4043_s3 + $0x308] sm:$0xff]  ;;  %v430_v2 = vld [vmem:[%s4043_s3 + $0x280] sm:$0xff] }
  0x3d   : > { %769 = vmatpush2.msra.mxu1 %v495_v14  ;;  %836 = vmatpush2.msra.mxu0 %v507_v15  ;;  %v448_v61 = vld [vmem:[%s4043_s3 + $0x310] sm:$0xff]  ;;  %v431_v0 = vld [vmem:[%s4043_s3 + $0x288] sm:$0xff]  ;;  %v442_v4 = vld [vmem:[%s4043_s3 + $0x2e0] sm:$0xff] }
  0x3e   : > { %770 = vmatprep.subr.mxu1 %v491_v16  ;;  %837 = vmatprep.subr.mxu0 %v503_v17  ;;  %v443_v1 = vld [vmem:[%s4043_s3 + $0x2e8] sm:$0xff]  ;;  %v2763_v6 = vld [vmem:[%s347_s17] sm:$0xff]  ;;  %v509_v8 = vld [vmem:[%s4043_s3 + $0x4f8] sm:$0xff] }
  0x3f   : > { %771 = vmatpush2.msra.mxu1 %v490_v18  ;;  %838 = vmatpush2.msra.mxu0 %v502_v19  ;;  %v349_v3 = vld [vmem:[%s347_s17 + $0x8] sm:$0xff]  ;;  %v438_v7 = vld [vmem:[%s4043_s3 + $0x2c0] sm:$0xff]  ;;  %v437_v9 = vld [vmem:[%s4043_s3 + $0x2b8] sm:$0xff] }
  0x40   : > { %772 = vmatprep.subr.mxu1 %v486_v20  ;;  %839 = vmatprep.subr.mxu0 %v498_v21  ;;  %v429_v10 = vld [vmem:[%s4043_s3 + $0x278] sm:$0xff]  ;;  %v504_v12 = vld [vmem:[%s4043_s3 + $0x4d0] sm:$0xff]  ;;  %v499_v15 = vld [vmem:[%s4043_s3 + $0x4a8] sm:$0xff] }
  0x41   : > { %773 = vmatpush2.msra.mxu1 %v485_v22  ;;  %840 = vmatpush2.msra.mxu0 %v497_v23  ;;  %v433_v11 = vld [vmem:[%s4043_s3 + $0x298] sm:$0xff]  ;;  %v432_v13 = vld [vmem:[%s4043_s3 + $0x290] sm:$0xff]  ;;  %v419_v16 = vld [vmem:[%s4043_s3 + $0x228] sm:$0xff] }
  0x42   : > { %774 = vmatprep.subr.mxu1 %v481_v24  ;;  %841 = vmatprep.subr.mxu0 %v493_v25  ;;  %v424_v14 = vld [vmem:[%s4043_s3 + $0x250] sm:$0xff]  ;;  %v1042_v17 = vld [vmem:[%s4045_s5 + $0x1e8] sm:$0xff]  ;;  %v494_v18 = vld [vmem:[%s4043_s3 + $0x480] sm:$0xff] }
  0x43   : > { %775 = vmatpush2.msra.mxu1 %v480_v26  ;;  %842 = vmatpush2.msra.mxu0 %v492_v27  ;;  %v1041_v19 = vld [vmem:[%s4045_s5 + $0x1e0] sm:$0xff]  ;;  %v1038_v21 = vld [vmem:[%s4045_s5 + $0x1c8] sm:$0xff]  ;;  %v489_v22 = vld [vmem:[%s4043_s3 + $0x458] sm:$0xff] }
  0x44   : > { %776 = vmatprep.subr.mxu1 %v476_v28  ;;  %843 = vmatprep.subr.mxu0 %v488_v29  ;;  %v414_v20 = vld [vmem:[%s4043_s3 + $0x200] sm:$0xff]  ;;  %v409_v24 = vld [vmem:[%s4043_s3 + $0x1d8] sm:$0xff]  ;;  %v1034_v25 = vld [vmem:[%s4045_s5 + $0x1a8] sm:$0xff] }
  0x45   : > { %777 = vmatpush2.msra.mxu1 %v475_v30  ;;  %844 = vmatpush2.msra.mxu0 %v487_v31  ;;  %v1037_v23 = vld [vmem:[%s4045_s5 + $0x1c0] sm:$0xff]  ;;  %v484_v26 = vld [vmem:[%s4043_s3 + $0x430] sm:$0xff]  ;;  %v1030_v29 = vld [vmem:[%s4045_s5 + $0x188] sm:$0xff] }
  0x46   : > { %778 = vmatprep.subr.mxu1 %v471_v32  ;;  %845 = vmatprep.subr.mxu0 %v483_v33  ;;  %v1033_v27 = vld [vmem:[%s4045_s5 + $0x1a0] sm:$0xff]  ;;  %v404_v28 = vld [vmem:[%s4043_s3 + $0x1b0] sm:$0xff]  ;;  %v479_v30 = vld [vmem:[%s4043_s3 + $0x408] sm:$0xff] }
  0x47   : > { %779 = vmatpush2.msra.mxu1 %v470_v34  ;;  %846 = vmatpush2.msra.mxu0 %v482_v35  ;;  %v1029_v31 = vld [vmem:[%s4045_s5 + $0x180] sm:$0xff]  ;;  %v399_v32 = vld [vmem:[%s4043_s3 + $0x188] sm:$0xff] }
  0x48   : > { %780 = vmatprep.subr.mxu1 %v466_v36  ;;  %847 = vmatprep.subr.mxu0 %v478_v37  ;;  %v1026_v33 = vld [vmem:[%s4045_s5 + $0x168] sm:$0xff]  ;;  %v474_v34 = vld [vmem:[%s4043_s3 + $0x3e0] sm:$0xff] }
  0x49   : > { %781 = vmatpush2.msra.mxu1 %v465_v38  ;;  %848 = vmatpush2.msra.mxu0 %v477_v39  ;;  %v1025_v35 = vld [vmem:[%s4045_s5 + $0x160] sm:$0xff]  ;;  %v1022_v37 = vld [vmem:[%s4045_s5 + $0x148] sm:$0xff]  ;;  %v469_v38 = vld [vmem:[%s4043_s3 + $0x3b8] sm:$0xff] }
  0x4a   : > { %782 = vmatprep.subr.mxu1 %v461_v40  ;;  %849 = vmatprep.subr.mxu0 %v473_v41  ;;  %v394_v36 = vld [vmem:[%s4043_s3 + $0x160] sm:$0xff]  ;;  %v389_v40 = vld [vmem:[%s4043_s3 + $0x138] sm:$0xff]  ;;  %v1018_v41 = vld [vmem:[%s4045_s5 + $0x128] sm:$0xff] }
  0x4b   : > { %783 = vmatpush2.msra.mxu1 %v460_v42  ;;  %850 = vmatpush2.msra.mxu0 %v472_v43  ;;  %v1021_v39 = vld [vmem:[%s4045_s5 + $0x140] sm:$0xff]  ;;  %v464_v42 = vld [vmem:[%s4043_s3 + $0x390] sm:$0xff] }
  0x4c   : > { %784 = vmatprep.subr.mxu1 %v456_v44  ;;  %851 = vmatprep.subr.mxu0 %v468_v45  ;;  %v1017_v43 = vld [vmem:[%s4045_s5 + $0x120] sm:$0xff]  ;;  %v384_v44 = vld [vmem:[%s4043_s3 + $0x110] sm:$0xff]  ;;  %v1014_v45 = vld [vmem:[%s4045_s5 + $0x108] sm:$0xff] }
  0x4d   : > { %785 = vmatpush2.msra.mxu1 %v455_v46  ;;  %852 = vmatpush2.msra.mxu0 %v467_v47  ;;  %v459_v46 = vld [vmem:[%s4043_s3 + $0x368] sm:$0xff]  ;;  %v1013_v47 = vld [vmem:[%s4045_s5 + $0x100] sm:$0xff] }
  0x4e   : > { %786 = vmatprep.subr.mxu1 %v451_v48  ;;  %853 = vmatprep.subr.mxu0 %v463_v49  ;;  %v379_v48 = vld [vmem:[%s4043_s3 + $0xe8] sm:$0xff] }
  0x4f   : > { %787 = vmatpush2.msra.mxu1 %v450_v50  ;;  %854 = vmatpush2.msra.mxu0 %v462_v51  ;;  %v1010_v49 = vld [vmem:[%s4045_s5 + $0xe8] sm:$0xff]  ;;  %v454_v50 = vld [vmem:[%s4043_s3 + $0x340] sm:$0xff] }
  0x50   : > { %788 = vmatprep.subr.mxu1 %v446_v52  ;;  %855 = vmatprep.subr.mxu0 %v458_v53  ;;  %v1009_v51 = vld [vmem:[%s4045_s5 + $0xe0] sm:$0xff]  ;;  %v1006_v53 = vld [vmem:[%s4045_s5 + $0xc8] sm:$0xff] }
  0x51   : > { %789 = vmatpush2.msra.mxu1 %v445_v54  ;;  %856 = vmatpush2.msra.mxu0 %v457_v55  ;;  %v374_v52 = vld [vmem:[%s4043_s3 + $0xc0] sm:$0xff]  ;;  %v449_v54 = vld [vmem:[%s4043_s3 + $0x318] sm:$0xff] }
  0x52   : > { %790 = vmatprep.subr.mxu1 %v441_v56  ;;  %857 = vmatprep.subr.mxu0 %v453_v57  ;;  %v1005_v55 = vld [vmem:[%s4045_s5 + $0xc0] sm:$0xff]  ;;  %v369_v56 = vld [vmem:[%s4043_s3 + $0x98] sm:$0xff]  ;;  %v1002_v57 = vld [vmem:[%s4045_s5 + $0xa8] sm:$0xff] }
  0x53   : > { %791 = vmatpush2.msra.mxu1 %v440_v58  ;;  %858 = vmatpush2.msra.mxu0 %v452_v59  ;;  %v444_v58 = vld [vmem:[%s4043_s3 + $0x2f0] sm:$0xff]  ;;  %v1001_v59 = vld [vmem:[%s4045_s5 + $0xa0] sm:$0xff] }
  0x54   : > { %792 = vmatprep.subr.mxu1 %v436_v60  ;;  %859 = vmatprep.subr.mxu0 %v448_v61  ;;  %v364_v60 = vld [vmem:[%s4043_s3 + $0x70] sm:$0xff]  ;;  %v998_v61 = vld [vmem:[%s4045_s5 + $0x88] sm:$0xff] }
  0x55   : > { %793 = vmatpush2.msra.mxu1 %v435_v62  ;;  %860 = vmatpush2.msra.mxu0 %v447_v63  ;;  %v439_v62 = vld [vmem:[%s4043_s3 + $0x2c8] sm:$0xff]  ;;  %v997_v63 = vld [vmem:[%s4045_s5 + $0x80] sm:$0xff] }
  0x56   : > { %794 = vmatprep.subr.mxu1 %v431_v0  ;;  %861 = vmatprep.subr.mxu0 %v443_v1  ;;  %v359_v0 = vld [vmem:[%s4043_s3 + $0x48] sm:$0xff] }
  0x57   : > { %795 = vmatpush2.msra.mxu1 %v430_v2  ;;  %796 = vmatprep.mubr.f32.mxu1 %v349_v3  ;;  %v994_v1 = vld [vmem:[%s4045_s5 + $0x68] sm:$0xff]  ;;  %v434_v2 = vld [vmem:[%s4043_s3 + $0x2a0] sm:$0xff] }
  0x58   : > { %862 = vmatpush2.msra.mxu0 %v442_v4  ;;  %797 = vmatmul.mubr.f32.vlgmr.msra.gmra.mxu1 %v2763_v6  ;;  %v354_v4 = vld [vmem:[%s4043_s3 + $0x20] sm:$0xff] }
  0x59   : > { %863 = vmatprep.subr.mxu0 %v438_v7  ;;  %2043 = vmatprep.subr.mxu1 %v509_v8  ;;  %v990_v7 = vld [vmem:[%s4045_s5 + $0x48] sm:$0xff] }
  0x5a   : > { %864 = vmatpush2.msra.mxu0 %v437_v9  ;;  %2044 = vmatpush3.msra.mxu1 %v429_v10  ;;  %v1170_v8 = vld [vmem:[%s4045_s5 + $0x5e8] sm:$0xff]  ;;  %v1169_v9 = vld [vmem:[%s4045_s5 + $0x5e0] sm:$0xff] }
  0x5b   : > { %865 = vmatprep.subr.mxu0 %v433_v11  ;;  %2045 = vmatprep.subr.mxu1 %v504_v12  ;;  %v989_v10 = vld [vmem:[%s4045_s5 + $0x40] sm:$0xff]  ;;  %v1166_v11 = vld [vmem:[%s4045_s5 + $0x5c8] sm:$0xff] }
  0x5c   : > { %866 = vmatpush2.msra.mxu0 %v432_v13  ;;  %867 = vmatprep.mubr.f32.mxu0 %v349_v3  ;;  %v986_v12 = vld [vmem:[%s4045_s5 + $0x28] sm:$0xff]  ;;  %v1165_v13 = vld [vmem:[%s4045_s5 + $0x5c0] sm:$0xff] }
  0x5d   : > { %2046 = vmatpush3.msra.mxu1 %v424_v14  ;;  %868 = vmatmul.mubr.f32.vlgmr.msra.gmra.mxu0 %v2763_v6  ;;  %v985_v14 = vld [vmem:[%s4045_s5 + $0x20] sm:$0xff] }
  0x5e   : > { %2047 = vmatprep.subr.mxu1 %v499_v15  ;;  %938 = vmatprep.mubr.f32.mxu1 %v349_v3  ;;  %v993_v3 = vld [vmem:[%s4045_s5 + $0x60] sm:$0xff]  ;;  %v1162_v15 = vld [vmem:[%s4045_s5 + $0x5a8] sm:$0xff] }
  0x5f   : > { %2048 = vmatpush3.msra.mxu1 %v419_v16  ;;  %1295 = vmatprep.subr.mxu0 %v1042_v17  ;;  %v982_v16 = vld [vmem:[%s4045_s5 + $0x8] sm:$0xff]  ;;  %v981_v17 = vld [vmem:[%s4045_s5] sm:$0xff] }
  0x60   : > { %2049 = vmatprep.subr.mxu1 %v494_v18  ;;  %1296 = vmatpush1.msra.mxu0 %v1041_v19  ;;  %v1158_v18 = vld [vmem:[%s4045_s5 + $0x588] sm:$0xff] }
  0x61   : > { %2050 = vmatpush3.msra.mxu1 %v414_v20  ;;  %1297 = vmatprep.subr.mxu0 %v1038_v21  ;;  %v1106_v19 = vld [vmem:[%s4045_s5 + $0x3e8] sm:$0xff]  ;;  %v1157_v20 = vld [vmem:[%s4045_s5 + $0x580] sm:$0xff] }
  0x62   : > { %2051 = vmatprep.subr.mxu1 %v489_v22  ;;  %1298 = vmatpush1.msra.mxu0 %v1037_v23  ;;  %v1105_v21 = vld [vmem:[%s4045_s5 + $0x3e0] sm:$0xff]  ;;  %v1154_v22 = vld [vmem:[%s4045_s5 + $0x568] sm:$0xff] }
  0x63   : > { %2052 = vmatpush3.msra.mxu1 %v409_v24  ;;  %1299 = vmatprep.subr.mxu0 %v1034_v25  ;;  %v1102_v23 = vld [vmem:[%s4045_s5 + $0x3c8] sm:$0xff]  ;;  %v1153_v24 = vld [vmem:[%s4045_s5 + $0x560] sm:$0xff] }
  0x64   : > { %2053 = vmatprep.subr.mxu1 %v484_v26  ;;  %1300 = vmatpush1.msra.mxu0 %v1033_v27  ;;  %v1101_v25 = vld [vmem:[%s4045_s5 + $0x3c0] sm:$0xff]  ;;  %v1150_v26 = vld [vmem:[%s4045_s5 + $0x548] sm:$0xff] }
  0x65   : > { %2054 = vmatpush3.msra.mxu1 %v404_v28  ;;  %1301 = vmatprep.subr.mxu0 %v1030_v29  ;;  %v1098_v27 = vld [vmem:[%s4045_s5 + $0x3a8] sm:$0xff]  ;;  %v1149_v28 = vld [vmem:[%s4045_s5 + $0x540] sm:$0xff] }
  0x66   : > { %2055 = vmatprep.subr.mxu1 %v479_v30  ;;  %1302 = vmatpush1.msra.mxu0 %v1029_v31  ;;  %v1097_v29 = vld [vmem:[%s4045_s5 + $0x3a0] sm:$0xff]  ;;  %v1146_v30 = vld [vmem:[%s4045_s5 + $0x528] sm:$0xff] }
  0x67   : > { %2056 = vmatpush3.msra.mxu1 %v399_v32  ;;  %1303 = vmatprep.subr.mxu0 %v1026_v33  ;;  %v1094_v31 = vld [vmem:[%s4045_s5 + $0x388] sm:$0xff]  ;;  %v1145_v32 = vld [vmem:[%s4045_s5 + $0x520] sm:$0xff] }
  0x68   : > { %2057 = vmatprep.subr.mxu1 %v474_v34  ;;  %1304 = vmatpush1.msra.mxu0 %v1025_v35  ;;  %v1093_v33 = vld [vmem:[%s4045_s5 + $0x380] sm:$0xff]  ;;  %v1142_v34 = vld [vmem:[%s4045_s5 + $0x508] sm:$0xff] }
  0x69   : > { %2058 = vmatpush3.msra.mxu1 %v394_v36  ;;  %1305 = vmatprep.subr.mxu0 %v1022_v37  ;;  %v1090_v35 = vld [vmem:[%s4045_s5 + $0x368] sm:$0xff]  ;;  %v1141_v36 = vld [vmem:[%s4045_s5 + $0x500] sm:$0xff] }
  0x6a   : > { %2059 = vmatprep.subr.mxu1 %v469_v38  ;;  %1306 = vmatpush1.msra.mxu0 %v1021_v39  ;;  %v1089_v37 = vld [vmem:[%s4045_s5 + $0x360] sm:$0xff]  ;;  %v1138_v38 = vld [vmem:[%s4045_s5 + $0x4e8] sm:$0xff] }
  0x6b   : > { %2060 = vmatpush3.msra.mxu1 %v389_v40  ;;  %1307 = vmatprep.subr.mxu0 %v1018_v41  ;;  %v1086_v39 = vld [vmem:[%s4045_s5 + $0x348] sm:$0xff]  ;;  %v1137_v40 = vld [vmem:[%s4045_s5 + $0x4e0] sm:$0xff] }
  0x6c   : > { %2061 = vmatprep.subr.mxu1 %v464_v42  ;;  %1308 = vmatpush1.msra.mxu0 %v1017_v43  ;;  %v1085_v41 = vld [vmem:[%s4045_s5 + $0x340] sm:$0xff]  ;;  %v1134_v42 = vld [vmem:[%s4045_s5 + $0x4c8] sm:$0xff] }
  0x6d   : > { %2062 = vmatpush3.msra.mxu1 %v384_v44  ;;  %1309 = vmatprep.subr.mxu0 %v1014_v45  ;;  %v1082_v43 = vld [vmem:[%s4045_s5 + $0x328] sm:$0xff]  ;;  %v1133_v44 = vld [vmem:[%s4045_s5 + $0x4c0] sm:$0xff] }
  0x6e   : > { %2063 = vmatprep.subr.mxu1 %v459_v46  ;;  %1310 = vmatpush1.msra.mxu0 %v1013_v47  ;;  %v1081_v45 = vld [vmem:[%s4045_s5 + $0x320] sm:$0xff]  ;;  %v1130_v46 = vld [vmem:[%s4045_s5 + $0x4a8] sm:$0xff] }
  0x6f   : > { %2064 = vmatpush3.msra.mxu1 %v379_v48  ;;  %1311 = vmatprep.subr.mxu0 %v1010_v49  ;;  %v1078_v47 = vld [vmem:[%s4045_s5 + $0x308] sm:$0xff]  ;;  %v1129_v48 = vld [vmem:[%s4045_s5 + $0x4a0] sm:$0xff] }
  0x70   : > { %2065 = vmatprep.subr.mxu1 %v454_v50  ;;  %1312 = vmatpush1.msra.mxu0 %v1009_v51  ;;  %v1077_v49 = vld [vmem:[%s4045_s5 + $0x300] sm:$0xff]  ;;  %v1126_v50 = vld [vmem:[%s4045_s5 + $0x488] sm:$0xff] }
  0x71   : > { %2066 = vmatpush3.msra.mxu1 %v374_v52  ;;  %1313 = vmatprep.subr.mxu0 %v1006_v53  ;;  %v1074_v51 = vld [vmem:[%s4045_s5 + $0x2e8] sm:$0xff]  ;;  %v1125_v52 = vld [vmem:[%s4045_s5 + $0x480] sm:$0xff] }
  0x72   : > { %2067 = vmatprep.subr.mxu1 %v449_v54  ;;  %1314 = vmatpush1.msra.mxu0 %v1005_v55  ;;  %v1073_v53 = vld [vmem:[%s4045_s5 + $0x2e0] sm:$0xff]  ;;  %v1122_v54 = vld [vmem:[%s4045_s5 + $0x468] sm:$0xff] }
  0x73   : > { %2068 = vmatpush3.msra.mxu1 %v369_v56  ;;  %1315 = vmatprep.subr.mxu0 %v1002_v57  ;;  %v1070_v55 = vld [vmem:[%s4045_s5 + $0x2c8] sm:$0xff]  ;;  %v1121_v56 = vld [vmem:[%s4045_s5 + $0x460] sm:$0xff] }
  0x74   : > { %2069 = vmatprep.subr.mxu1 %v444_v58  ;;  %1316 = vmatpush1.msra.mxu0 %v1001_v59  ;;  %v1069_v57 = vld [vmem:[%s4045_s5 + $0x2c0] sm:$0xff]  ;;  %v1118_v58 = vld [vmem:[%s4045_s5 + $0x448] sm:$0xff] }
  0x75   : > { %2070 = vmatpush3.msra.mxu1 %v364_v60  ;;  %1317 = vmatprep.subr.mxu0 %v998_v61  ;;  %v1066_v59 = vld [vmem:[%s4045_s5 + $0x2a8] sm:$0xff]  ;;  %v1117_v60 = vld [vmem:[%s4045_s5 + $0x440] sm:$0xff] }
  0x76   : > { %2071 = vmatprep.subr.mxu1 %v439_v62  ;;  %1318 = vmatpush1.msra.mxu0 %v997_v63  ;;  %v1065_v61 = vld [vmem:[%s4045_s5 + $0x2a0] sm:$0xff]  ;;  %v1114_v62 = vld [vmem:[%s4045_s5 + $0x428] sm:$0xff] }
  0x77   : > { %2072 = vmatpush3.msra.mxu1 %v359_v0  ;;  %1319 = vmatprep.subr.mxu0 %v994_v1  ;;  %v1113_v63 = vld [vmem:[%s4045_s5 + $0x420] sm:$0xff]  ;;  %v1110_v0 = vld [vmem:[%s4045_s5 + $0x408] sm:$0xff] }
  0x78   : > { %2073 = vmatprep.subr.mxu1 %v434_v2  ;;  %1320 = vmatpush1.msra.mxu0 %v993_v3  ;;  %v1109_v1 = vld [vmem:[%s4045_s5 + $0x400] sm:$0xff]  ;;  %v1234_v2 = vld [vmem:[%s4045_s5 + $0x7e8] sm:$0xff] }
  0x79   : > { %2074 = vmatpush3.msra.mxu1 %v354_v4  ;;  %1321 = vmatprep.subr.mxu0 %v990_v7  ;;  %v1233_v3 = vld [vmem:[%s4045_s5 + $0x7e0] sm:$0xff]  ;;  %v1230_v4 = vld [vmem:[%s4045_s5 + $0x7c8] sm:$0xff] }
  0x7a   : > { %939 = vmatmul.mubr.f32.vlgmr.msra.gmra.mxu1 %v2763_v6  ;;  %1366 = vmatprep.subr.mxu1 %v1170_v8  ;;  %v1161_v6 = vld [vmem:[%s4045_s5 + $0x5a0] sm:$0xff]  ;;  %v1062_v7 = vld [vmem:[%s4045_s5 + $0x288] sm:$0xff] }
  0x7b   : > { %1367 = vmatpush1.msra.mxu1 %v1169_v9  ;;  %1322 = vmatpush1.msra.mxu0 %v989_v10  ;;  %v1229_v8 = vld [vmem:[%s4045_s5 + $0x7c0] sm:$0xff]  ;;  %v1226_v10 = vld [vmem:[%s4045_s5 + $0x7a8] sm:$0xff] }
  0x7c   : > { %1368 = vmatprep.subr.mxu1 %v1166_v11  ;;  %1323 = vmatprep.subr.mxu0 %v986_v12  ;;  %v1061_v9 = vld [vmem:[%s4045_s5 + $0x280] sm:$0xff]  ;;  %v1058_v11 = vld [vmem:[%s4045_s5 + $0x268] sm:$0xff] }
  0x7d   : > { %1369 = vmatpush1.msra.mxu1 %v1165_v13  ;;  %1324 = vmatpush1.msra.mxu0 %v985_v14  ;;  %v1225_v12 = vld [vmem:[%s4045_s5 + $0x7a0] sm:$0xff]  ;;  %v1222_v14 = vld [vmem:[%s4045_s5 + $0x788] sm:$0xff] }
  0x7e   : > { %1370 = vmatprep.subr.mxu1 %v1162_v15  ;;  %1325 = vmatprep.subr.mxu0 %v982_v16  ;;  %v1057_v13 = vld [vmem:[%s4045_s5 + $0x260] sm:$0xff]  ;;  %v1054_v15 = vld [vmem:[%s4045_s5 + $0x248] sm:$0xff] }
  0x7f   : > { %1371 = vmatpush1.msra.mxu1 %v1161_v6  ;;  %1326 = vmatpush1.msra.mxu0 %v981_v17  ;;  %v1221_v16 = vld [vmem:[%s4045_s5 + $0x780] sm:$0xff]  ;;  %v1218_v17 = vld [vmem:[%s4045_s5 + $0x768] sm:$0xff] }
  0x80   : > { %1372 = vmatprep.subr.mxu1 %v1158_v18  ;;  %1327 = vmatprep.subr.mxu0 %v1106_v19  ;;  %v1053_v6 = vld [vmem:[%s4045_s5 + $0x240] sm:$0xff]  ;;  %v1050_v18 = vld [vmem:[%s4045_s5 + $0x228] sm:$0xff] }
  0x81   : > { %1373 = vmatpush1.msra.mxu1 %v1157_v20  ;;  %1328 = vmatpush2.msra.mxu0 %v1105_v21  ;;  %v1217_v19 = vld [vmem:[%s4045_s5 + $0x760] sm:$0xff]  ;;  %v1214_v21 = vld [vmem:[%s4045_s5 + $0x748] sm:$0xff] }
  0x82   : > { %1374 = vmatprep.subr.mxu1 %v1154_v22  ;;  %1329 = vmatprep.subr.mxu0 %v1102_v23  ;;  %v1049_v20 = vld [vmem:[%s4045_s5 + $0x220] sm:$0xff]  ;;  %v1046_v22 = vld [vmem:[%s4045_s5 + $0x208] sm:$0xff] }
  0x83   : > { %1375 = vmatpush1.msra.mxu1 %v1153_v24  ;;  %1330 = vmatpush2.msra.mxu0 %v1101_v25  ;;  %v1213_v23 = vld [vmem:[%s4045_s5 + $0x740] sm:$0xff]  ;;  %v1210_v25 = vld [vmem:[%s4045_s5 + $0x728] sm:$0xff] }
  0x84   : > { %1376 = vmatprep.subr.mxu1 %v1150_v26  ;;  %1331 = vmatprep.subr.mxu0 %v1098_v27  ;;  %v1045_v24 = vld [vmem:[%s4045_s5 + $0x200] sm:$0xff]  ;;  %v1206_v27 = vld [vmem:[%s4045_s5 + $0x708] sm:$0xff] }
  0x85   : > { %1377 = vmatpush1.msra.mxu1 %v1149_v28  ;;  %1332 = vmatpush2.msra.mxu0 %v1097_v29  ;;  %v1209_v26 = vld [vmem:[%s4045_s5 + $0x720] sm:$0xff]  ;;  %v1202_v29 = vld [vmem:[%s4045_s5 + $0x6e8] sm:$0xff] }
  0x86   : > { %1378 = vmatprep.subr.mxu1 %v1146_v30  ;;  %1333 = vmatprep.subr.mxu0 %v1094_v31  ;;  %v1205_v28 = vld [vmem:[%s4045_s5 + $0x700] sm:$0xff]  ;;  %v1198_v31 = vld [vmem:[%s4045_s5 + $0x6c8] sm:$0xff] }
  0x87   : > { %1379 = vmatpush1.msra.mxu1 %v1145_v32  ;;  %1334 = vmatpush2.msra.mxu0 %v1093_v33  ;;  %v1201_v30 = vld [vmem:[%s4045_s5 + $0x6e0] sm:$0xff]  ;;  %v1194_v33 = vld [vmem:[%s4045_s5 + $0x6a8] sm:$0xff] }
  0x88   : > { %1380 = vmatprep.subr.mxu1 %v1142_v34  ;;  %1335 = vmatprep.subr.mxu0 %v1090_v35  ;;  %v1197_v32 = vld [vmem:[%s4045_s5 + $0x6c0] sm:$0xff]  ;;  %v1190_v35 = vld [vmem:[%s4045_s5 + $0x688] sm:$0xff] }
  0x89   : > { %1381 = vmatpush1.msra.mxu1 %v1141_v36  ;;  %1336 = vmatpush2.msra.mxu0 %v1089_v37  ;;  %v1193_v34 = vld [vmem:[%s4045_s5 + $0x6a0] sm:$0xff]  ;;  %v1186_v37 = vld [vmem:[%s4045_s5 + $0x668] sm:$0xff] }
  0x8a   : > { %1382 = vmatprep.subr.mxu1 %v1138_v38  ;;  %1337 = vmatprep.subr.mxu0 %v1086_v39  ;;  %v1189_v36 = vld [vmem:[%s4045_s5 + $0x680] sm:$0xff]  ;;  %v1182_v39 = vld [vmem:[%s4045_s5 + $0x648] sm:$0xff] }
  0x8b   : > { %1383 = vmatpush1.msra.mxu1 %v1137_v40  ;;  %1338 = vmatpush2.msra.mxu0 %v1085_v41  ;;  %v1185_v38 = vld [vmem:[%s4045_s5 + $0x660] sm:$0xff]  ;;  %v1178_v41 = vld [vmem:[%s4045_s5 + $0x628] sm:$0xff] }
  0x8c   : > { %1384 = vmatprep.subr.mxu1 %v1134_v42  ;;  %1339 = vmatprep.subr.mxu0 %v1082_v43  ;;  %v1181_v40 = vld [vmem:[%s4045_s5 + $0x640] sm:$0xff]  ;;  %v1266_v42 = vld [vmem:[%s4045_s5 + $0x8e8] sm:$0xff] }
  0x8d   : > { %1385 = vmatpush1.msra.mxu1 %v1133_v44  ;;  %1340 = vmatpush2.msra.mxu0 %v1081_v45  ;;  %v1177_v43 = vld [vmem:[%s4045_s5 + $0x620] sm:$0xff]  ;;  %v1174_v44 = vld [vmem:[%s4045_s5 + $0x608] sm:$0xff] }
  0x8e   : > { %1386 = vmatprep.subr.mxu1 %v1130_v46  ;;  %1341 = vmatprep.subr.mxu0 %v1078_v47  ;;  %v1173_v45 = vld [vmem:[%s4045_s5 + $0x600] sm:$0xff]  ;;  %v1172_v46 = vld [vmem:[%s4045_s5 + $0x5f8] sm:$0xff] }
  0x8f   : > { %1387 = vmatpush1.msra.mxu1 %v1129_v48  ;;  %1342 = vmatpush2.msra.mxu0 %v1077_v49 }
  0x90   : > { %1388 = vmatprep.subr.mxu1 %v1126_v50  ;;  %1343 = vmatprep.subr.mxu0 %v1074_v51  ;;  %v946_v51 = vlaneseq }
  0x91   : > { %1389 = vmatpush1.msra.mxu1 %v1125_v52  ;;  %1344 = vmatpush2.msra.mxu0 %v1073_v53 }
  0x92   : > { %1390 = vmatprep.subr.mxu1 %v1122_v54  ;;  %1345 = vmatprep.subr.mxu0 %v1070_v55  ;;  %v3268_v52 = vshrl.u32 %v946_v51, 7  ;;  %v3274_v55 = vld [vmem:[%s4044_s4] sm:$0x1f]  ;;  %v1136_v51 = vld [vmem:[%s4045_s5 + $0x4d8] sm:$0xff] }
  0x93   : > { %1391 = vmatpush1.msra.mxu1 %v1121_v56  ;;  %1346 = vmatpush2.msra.mxu0 %v1069_v57 }
  0x94   : > { %1392 = vmatprep.subr.mxu1 %v1118_v58  ;;  %1347 = vmatprep.subr.mxu0 %v1066_v59  ;;  %v948_v54 = vsub.s32 0, %v3268_v52  ;;  %v952_v56 = vsub.s32 1, %v3268_v52 }
  0x95   : > { %1393 = vmatpush1.msra.mxu1 %v1117_v60  ;;  %1348 = vmatpush2.msra.mxu0 %v1065_v61 }
  0x96   : > { %1394 = vmatprep.subr.mxu1 %v1114_v62  ;;  %1349 = vmatprep.subr.mxu0 %v1062_v7  ;;  %v949_v59 = vrot.slane %v3274_v55, %v948_v54  ;;  %v953_v61 = vrot.slane %v3274_v55, %v952_v56  ;;  %v956_v62 = vsub.s32 2, %v3268_v52 }
  0x97   : > { %1395 = vmatpush1.msra.mxu1 %v1113_v63  ;;  %1350 = vmatpush2.msra.mxu0 %v1061_v9 }
  0x98   : > { %1396 = vmatprep.subr.mxu1 %v1110_v0  ;;  %1351 = vmatprep.subr.mxu0 %v1058_v11  ;;  %v960_v0 = vsub.s32 3, %v3268_v52  ;;  %v957_v7 = vrot.slane %v3274_v55, %v956_v62 }
  0x99   : > { %1397 = vmatpush1.msra.mxu1 %v1109_v1  ;;  %1352 = vmatpush2.msra.mxu0 %v1057_v13 }
  0x9a   : > { %1398 = vmatprep.subr.mxu1 %v1234_v2  ;;  %1353 = vmatprep.subr.mxu0 %v1054_v15  ;;  %v961_v9 = vrot.slane %v3274_v55, %v960_v0 }
  0x9b   : > { %1399 = vmatpush2.msra.mxu1 %v1233_v3  ;;  %1354 = vmatpush2.msra.mxu0 %v1053_v6 }
  0x9c   : > { %1400 = vmatprep.subr.mxu1 %v1230_v4  ;;  %1355 = vmatprep.subr.mxu0 %v1050_v18  ;;  %v1258_v18 = vld [vmem:[%s4045_s5 + $0x8a8] sm:$0xff] }
  0x9d   : > { %1401 = vmatpush2.msra.mxu1 %v1229_v8  ;;  %1356 = vmatpush2.msra.mxu0 %v1049_v20  ;;  %v1257_v20 = vld [vmem:[%s4045_s5 + $0x8a0] sm:$0xff] }
  0x9e   : > { %1402 = vmatprep.subr.mxu1 %v1226_v10  ;;  %1357 = vmatprep.subr.mxu0 %v1046_v22  ;;  %v1171_v22 = vld [vmem:[%s4045_s5 + $0x5f0] sm:$0xff] }
  0x9f   : > { %1403 = vmatpush2.msra.mxu1 %v1225_v12  ;;  %1358 = vmatpush2.msra.mxu0 %v1045_v24  ;;  %v1254_v24 = vld [vmem:[%s4045_s5 + $0x888] sm:$0xff] }
  0xa0   : > { %1404 = vmatprep.subr.mxu1 %v1222_v14  ;;  %1453 = vmatprep.subr.mxu0 %v1266_v42  ;;  %v1265_v14 = vld [vmem:[%s4045_s5 + $0x8e0] sm:$0xff] }
  0xa1   : > { %1405 = vmatpush2.msra.mxu1 %v1221_v16  ;;  %v1262_v16 = vld [vmem:[%s4045_s5 + $0x8c8] sm:$0xff]  ;;  %v1237_v42 = vld [vmem:[%s4045_s5 + $0x800] sm:$0xff] }
  0xa2   : > { %1406 = vmatprep.subr.mxu1 %v1218_v17  ;;  %v1261_v17 = vld [vmem:[%s4045_s5 + $0x8c0] sm:$0xff] }
  0xa3   : > { %1407 = vmatpush2.msra.mxu1 %v1217_v19 }
  0xa4   : > { %1408 = vmatprep.subr.mxu1 %v1214_v21 }
  0xa5   : > { %1409 = vmatpush2.msra.mxu1 %v1213_v23  ;;  %v1168_v23 = vld [vmem:[%s4045_s5 + $0x5d8] sm:$0xff] }
  0xa6   : > { %1410 = vmatprep.subr.mxu1 %v1210_v25  ;;  %v1167_v25 = vld [vmem:[%s4045_s5 + $0x5d0] sm:$0xff] }
  0xa7   : > { %1411 = vmatpush2.msra.mxu1 %v1209_v26  ;;  %v1253_v26 = vld [vmem:[%s4045_s5 + $0x880] sm:$0xff] }
  0xa8   : > { %1412 = vmatprep.subr.mxu1 %v1206_v27  ;;  %v1164_v27 = vld [vmem:[%s4045_s5 + $0x5b8] sm:$0xff] }
  0xa9   : > { %1413 = vmatpush2.msra.mxu1 %v1205_v28  ;;  %v1250_v28 = vld [vmem:[%s4045_s5 + $0x868] sm:$0xff] }
  0xaa   : > { %1414 = vmatprep.subr.mxu1 %v1202_v29  ;;  %v1163_v29 = vld [vmem:[%s4045_s5 + $0x5b0] sm:$0xff] }
  0xab   : > { %1415 = vmatpush2.msra.mxu1 %v1201_v30  ;;  %v1249_v30 = vld [vmem:[%s4045_s5 + $0x860] sm:$0xff] }
  0xac   : > { %1416 = vmatprep.subr.mxu1 %v1198_v31  ;;  %v1160_v31 = vld [vmem:[%s4045_s5 + $0x598] sm:$0xff] }
  0xad   : > { %1417 = vmatpush2.msra.mxu1 %v1197_v32  ;;  %v1246_v32 = vld [vmem:[%s4045_s5 + $0x848] sm:$0xff] }
  0xae   : > { %1418 = vmatprep.subr.mxu1 %v1194_v33  ;;  %v1159_v33 = vld [vmem:[%s4045_s5 + $0x590] sm:$0xff] }
  0xaf   : > { %1419 = vmatpush2.msra.mxu1 %v1193_v34  ;;  %v1245_v34 = vld [vmem:[%s4045_s5 + $0x840] sm:$0xff] }
  0xb0   : > { %1420 = vmatprep.subr.mxu1 %v1190_v35  ;;  %v1156_v35 = vld [vmem:[%s4045_s5 + $0x578] sm:$0xff] }
  0xb1   : > { %1421 = vmatpush2.msra.mxu1 %v1189_v36  ;;  %v1242_v36 = vld [vmem:[%s4045_s5 + $0x828] sm:$0xff] }
  0xb2   : > { %1422 = vmatprep.subr.mxu1 %v1186_v37  ;;  %v1155_v37 = vld [vmem:[%s4045_s5 + $0x570] sm:$0xff] }
  0xb3   : > { %1423 = vmatpush2.msra.mxu1 %v1185_v38  ;;  %v1241_v38 = vld [vmem:[%s4045_s5 + $0x820] sm:$0xff] }
  0xb4   : > { %1424 = vmatprep.subr.mxu1 %v1182_v39  ;;  %v1152_v39 = vld [vmem:[%s4045_s5 + $0x558] sm:$0xff] }
  0xb5   : > { %1425 = vmatpush2.msra.mxu1 %v1181_v40  ;;  %v1238_v40 = vld [vmem:[%s4045_s5 + $0x808] sm:$0xff] }
  0xb6   : > { %1426 = vmatprep.subr.mxu1 %v1178_v41  ;;  %v1151_v41 = vld [vmem:[%s4045_s5 + $0x550] sm:$0xff] }
  0xb7   : > { %1427 = vmatpush2.msra.mxu1 %v1177_v43  ;;  %v1148_v43 = vld [vmem:[%s4045_s5 + $0x538] sm:$0xff] }
  0xb8   : > { %1428 = vmatprep.subr.mxu1 %v1174_v44  ;;  %v1044_v44 = vld [vmem:[%s4045_s5 + $0x1f8] sm:$0xff] }
  0xb9   : > { %1429 = vmatpush2.msra.mxu1 %v1173_v45  ;;  %v1147_v45 = vld [vmem:[%s4045_s5 + $0x530] sm:$0xff] }
  0xba   : > { %1579 = vmatprep.subr.mxu1 %v1172_v46  ;;  %v1144_v46 = vld [vmem:[%s4045_s5 + $0x518] sm:$0xff] }
  0xd8   : > { %v586_v47 = vpop.f32.mrf.mxu0  ;;  %v657_v53 = vpop.f32.mrf.mxu1 }
  0xda   : > { %v588_v48 = vpop.f32.mrf.mxu0  ;;  %v659_v57 = vpop.f32.mrf.mxu1 }
  0xdc   : > { %v3266_v49 = vpop.f32.mrf.mxu0 }
  0xde   : > { %v2152_v50 = vpop.f32.mrf.mxu0 }
  0xdf   : > { %v1139_v50 = vld [vmem:[%s4045_s5 + $0x4f0] sm:$0xff] }
 0x118   : > { %v798_v58 = vpop.f32.mrf.mxu1 }
 0x119   : > { %v799_v60 = vadd.f32 %v798_v58, %v586_v47  ;;  %v1143_v47 = vld [vmem:[%s4045_s5 + $0x510] sm:$0xff]  ;;  %v964_v58 = vsub.s32 4, %v3268_v52 }
 0x11a   : > { %v800_v63 = vpop.f32.mrf.mxu1 }
 0x11b   : > { %v801_v1 = vadd.f32 %v800_v63, %v588_v48  ;;  %v3285_v2 = vadd.f32 %v949_v59, %v799_v60  ;;  %v1140_v48 = vld [vmem:[%s4045_s5 + $0x4f8] sm:$0xff]  ;;  %v1131_v59 = vld [vmem:[%s4045_s5 + $0x4b0] sm:$0xff] }
 0x11c   : > { %v1127_v63 = vld [vmem:[%s4045_s5 + $0x490] sm:$0xff] }
 0x11d   : > { %v3287_v3 = vadd.f32 %v953_v61, %v801_v1  ;;  %v869_v4 = vpop.f32.mrf.mxu0  ;;  %v976_v12 = vmax.f32 %v3285_v2, 0.0  ;;  %v1128_v61 = vld [vmem:[%s4045_s5 + $0x498] sm:$0xff] }
 0x11e   : > { %v870_v8 = vadd.f32 %v869_v4, %v657_v53  ;;  %v1135_v53 = vld [vmem:[%s4045_s5 + $0x4d0] sm:$0xff]  ;;  %v1124_v4 = vld [vmem:[%s4045_s5 + $0x478] sm:$0xff] }
 0x11f   : > { %v977_v10 = vmax.f32 %v3287_v3, 0.0  ;;  %v871_v11 = vpop.f32.mrf.mxu0  ;;  %v1032_v3 = vld [vmem:[%s4045_s5 + $0x198] sm:$0xff] }
 0x120   : > { %v872_v13 = vadd.f32 %v871_v11, %v659_v57  ;;  %v3300_v15 = vadd.f32 %v957_v7, %v870_v8  ;;  %v1132_v57 = vld [vmem:[%s4045_s5 + $0x4b8] sm:$0xff]  ;;  %v965_v8 = vrot.slane %v3274_v55, %v964_v58 }
 0x121   : > { %1359 = vmatprep.mubr.f32.mxu0 %v977_v10  ;;  %v1120_v11 = vld [vmem:[%s4045_s5 + $0x458] sm:$0xff] }
 0x122   : > { %v974_v6 = vadd.f32 %v961_v9, %v872_v13  ;;  %1360 = vmatmul.mubr.f32.vlgmr.msra.gmra.mxu0 %v976_v12  ;;  %v978_v21 = vmax.f32 %v3300_v15, 0.0  ;;  %v1123_v9 = vld [vmem:[%s4045_s5 + $0x470] sm:$0xff]  ;;  %v1116_v55 = vld [vmem:[%s4045_s5 + $0x438] sm:$0xff] }
 0x123   : > { %1454 = vmatpush1.msra.mxu0 %v1265_v14  ;;  %1501 = vmatprep.mubr.f32.mxu0 %v2256_v5  ;;  %v1119_v14 = vld [vmem:[%s4045_s5 + $0x450] sm:$0xff]  ;;  %v1204_v58 = vld [vmem:[%s4045_s5 + $0x6f8] sm:$0xff] }
 0x124   : > { %v979_v19 = vmax.f32 %v974_v6, 0.0  ;;  %1455 = vmatprep.subr.mxu0 %v1262_v16  ;;  %v1115_v6 = vld [vmem:[%s4045_s5 + $0x430] sm:$0xff]  ;;  %v1740_v15 = vld [vmem:[%s4047_s7 + $0x78] sm:$0xff] }
 0x125   : > { %1456 = vmatpush1.msra.mxu0 %v1261_v17  ;;  %v1728_v2 = vld [vmem:[%s4047_s7 + $0x18] sm:$0xff] }
 0x126   : > { %1430 = vmatprep.mubr.f32.mxu1 %v979_v19  ;;  %1457 = vmatprep.subr.mxu0 %v1258_v18  ;;  %v1043_v18 = vld [vmem:[%s4045_s5 + $0x1f0] sm:$0xff] }
 0x127   : > { %1431 = vmatmul.mubr.f32.vlgmr.msra.gmra.mxu1 %v978_v21  ;;  %1458 = vmatpush1.msra.mxu0 %v1257_v20  ;;  %v1111_v20 = vld [vmem:[%s4045_s5 + $0x410] sm:$0xff] }
 0x128   : > { %1580 = vmatpush1.msra.mxu1 %v1171_v22  ;;  %1643 = vmatprep.mubr.f32.mxu1 %v979_v19  ;;  %v1040_v19 = vld [vmem:[%s4045_s5 + $0x1d8] sm:$0xff]  ;;  %v1039_v22 = vld [vmem:[%s4045_s5 + $0x1d0] sm:$0xff] }
 0x129   : > { %1581 = vmatprep.subr.mxu1 %v1168_v23  ;;  %1459 = vmatprep.subr.mxu0 %v1254_v24  ;;  %v1236_v23 = vld [vmem:[%s4045_s5 + $0x7f8] sm:$0xff] }
 0x12a   : > { %1582 = vmatpush1.msra.mxu1 %v1167_v25  ;;  %1460 = vmatpush1.msra.mxu0 %v1253_v26  ;;  %v1036_v24 = vld [vmem:[%s4045_s5 + $0x1b8] sm:$0xff]  ;;  %v1235_v25 = vld [vmem:[%s4045_s5 + $0x7f0] sm:$0xff] }
 0x12b   : > { %1583 = vmatprep.subr.mxu1 %v1164_v27  ;;  %1461 = vmatprep.subr.mxu0 %v1250_v28  ;;  %v1035_v26 = vld [vmem:[%s4045_s5 + $0x1b0] sm:$0xff]  ;;  %v1232_v27 = vld [vmem:[%s4045_s5 + $0x7d8] sm:$0xff] }
 0x12c   : > { %1584 = vmatpush1.msra.mxu1 %v1163_v29  ;;  %1462 = vmatpush1.msra.mxu0 %v1249_v30  ;;  %v1031_v28 = vld [vmem:[%s4045_s5 + $0x190] sm:$0xff]  ;;  %v1228_v29 = vld [vmem:[%s4045_s5 + $0x7b8] sm:$0xff] }
 0x12d   : > { %1585 = vmatprep.subr.mxu1 %v1160_v31  ;;  %1463 = vmatprep.subr.mxu0 %v1246_v32  ;;  %v1028_v30 = vld [vmem:[%s4045_s5 + $0x178] sm:$0xff]  ;;  %v1227_v31 = vld [vmem:[%s4045_s5 + $0x7b0] sm:$0xff] }
 0x12e   : > { %1586 = vmatpush1.msra.mxu1 %v1159_v33  ;;  %1464 = vmatpush1.msra.mxu0 %v1245_v34  ;;  %v1027_v32 = vld [vmem:[%s4045_s5 + $0x170] sm:$0xff]  ;;  %v1224_v33 = vld [vmem:[%s4045_s5 + $0x798] sm:$0xff] }
 0x12f   : > { %1587 = vmatprep.subr.mxu1 %v1156_v35  ;;  %1465 = vmatprep.subr.mxu0 %v1242_v36  ;;  %v1024_v34 = vld [vmem:[%s4045_s5 + $0x158] sm:$0xff]  ;;  %v1223_v35 = vld [vmem:[%s4045_s5 + $0x790] sm:$0xff] }
 0x130   : > { %1588 = vmatpush1.msra.mxu1 %v1155_v37  ;;  %1466 = vmatpush1.msra.mxu0 %v1241_v38  ;;  %v1023_v36 = vld [vmem:[%s4045_s5 + $0x150] sm:$0xff]  ;;  %v1220_v37 = vld [vmem:[%s4045_s5 + $0x778] sm:$0xff] }
 0x131   : > { %1589 = vmatprep.subr.mxu1 %v1152_v39  ;;  %1467 = vmatprep.subr.mxu0 %v1238_v40  ;;  %v1020_v38 = vld [vmem:[%s4045_s5 + $0x138] sm:$0xff]  ;;  %v1219_v39 = vld [vmem:[%s4045_s5 + $0x770] sm:$0xff] }
 0x132   : > { %1590 = vmatpush1.msra.mxu1 %v1151_v41  ;;  %1468 = vmatpush1.msra.mxu0 %v1237_v42  ;;  %v1019_v40 = vld [vmem:[%s4045_s5 + $0x130] sm:$0xff]  ;;  %v1216_v41 = vld [vmem:[%s4045_s5 + $0x758] sm:$0xff] }
 0x133   : > { %1591 = vmatprep.subr.mxu1 %v1148_v43  ;;  %1508 = vmatprep.subr.mxu0 %v1044_v44  ;;  %v1016_v42 = vld [vmem:[%s4045_s5 + $0x118] sm:$0xff]  ;;  %v1215_v43 = vld [vmem:[%s4045_s5 + $0x750] sm:$0xff] }
 0x134   : > { %1592 = vmatpush1.msra.mxu1 %v1147_v45  ;;  %v1015_v44 = vld [vmem:[%s4045_s5 + $0x110] sm:$0xff]  ;;  %v1212_v45 = vld [vmem:[%s4045_s5 + $0x738] sm:$0xff] }
 0x135   : > { %1593 = vmatprep.subr.mxu1 %v1144_v46  ;;  %v1012_v46 = vld [vmem:[%s4045_s5 + $0xf8] sm:$0xff] }
 0x136   : > { %1594 = vmatpush1.msra.mxu1 %v1143_v47  ;;  %v1211_v47 = vld [vmem:[%s4045_s5 + $0x730] sm:$0xff] }
 0x137   : > { %1595 = vmatprep.subr.mxu1 %v1140_v48  ;;  %v1011_v48 = vld [vmem:[%s4045_s5 + $0xf0] sm:$0xff] }
 0x138   : > { %1596 = vmatpush1.msra.mxu1 %v1139_v50  ;;  %v1208_v50 = vld [vmem:[%s4045_s5 + $0x718] sm:$0xff] }
 0x139   : > { %1597 = vmatprep.subr.mxu1 %v1136_v51  ;;  %v1008_v51 = vld [vmem:[%s4045_s5 + $0xd8] sm:$0xff] }
 0x13a   : > { %v2075_v60 = vpop.f32.mrf.mxu1  ;;  %1598 = vmatpush1.msra.mxu1 %v1135_v53  ;;  %v1207_v53 = vld [vmem:[%s4045_s5 + $0x710] sm:$0xff] }
 0x13b   : > { %1599 = vmatprep.subr.mxu1 %v1132_v57  ;;  %v1007_v57 = vld [vmem:[%s4045_s5 + $0xd0] sm:$0xff] }
 0x13c   : > { %v2076_v1 = vpop.f32.mrf.mxu1  ;;  %1600 = vmatpush1.msra.mxu1 %v1131_v59  ;;  %v1004_v59 = vld [vmem:[%s4045_s5 + $0xb8] sm:$0xff] }
 0x13d   : > { %v2077_v7 = vadd.f32 %v2076_v1, %v2075_v60  ;;  %1601 = vmatprep.subr.mxu1 %v1128_v61  ;;  %v1203_v60 = vld [vmem:[%s4045_s5 + $0x6f0] sm:$0xff]  ;;  %v1000_v1 = vld [vmem:[%s4045_s5 + $0x98] sm:$0xff] }
 0x13e   : > { %1602 = vmatpush1.msra.mxu1 %v1127_v63  ;;  %v1003_v61 = vld [vmem:[%s4045_s5 + $0xb0] sm:$0xff]  ;;  %v1200_v63 = vld [vmem:[%s4045_s5 + $0x6d8] sm:$0xff] }
 0x13f   : > { %v941_v13 = vadd.f32 %v2077_v7, %v3266_v49  ;;  %1603 = vmatprep.subr.mxu1 %v1124_v4  ;;  %v1112_v49 = vld [vmem:[%s4045_s5 + $0x418] sm:$0xff]  ;;  %v1199_v4 = vld [vmem:[%s4045_s5 + $0x6d0] sm:$0xff] }
 0x140   : > { %1604 = vmatpush1.msra.mxu1 %v1123_v9  ;;  %v999_v7 = vld [vmem:[%s4045_s5 + $0x90] sm:$0xff]  ;;  %v996_v9 = vld [vmem:[%s4045_s5 + $0x78] sm:$0xff] }
 0x141   : > { %v3442_v16 = vadd.f32 %v965_v8, %v941_v13  ;;  %1605 = vmatprep.subr.mxu1 %v1120_v11  ;;  %v1196_v8 = vld [vmem:[%s4045_s5 + $0x6b8] sm:$0xff]  ;;  %v1195_v11 = vld [vmem:[%s4045_s5 + $0x6b0] sm:$0xff] }
 0x142   : > { %1606 = vmatpush1.msra.mxu1 %v1119_v14  ;;  %v995_v13 = vld [vmem:[%s4045_s5 + $0x70] sm:$0xff]  ;;  %v1192_v14 = vld [vmem:[%s4045_s5 + $0x698] sm:$0xff] }
 0x143   : > { %v980_v17 = vmax.f32 %v3442_v16, 0.0  ;;  %1607 = vmatprep.subr.mxu1 %v1116_v55  ;;  %v992_v55 = vld [vmem:[%s4045_s5 + $0x58] sm:$0xff]  ;;  %v1786_v16 = vld [vmem:[%s4047_s7 + $0x1e8] sm:$0xff] }
 0x144   : > { %1608 = vmatpush1.msra.mxu1 %v1115_v6  ;;  %v1191_v6 = vld [vmem:[%s4045_s5 + $0x690] sm:$0xff] }
 0x145   : > { %2033 = vmatmul.mubr.msk.f32.vlgmr.msra.gmra.mxu0 %vm1291_vm2, %v980_v17  ;;  %1609 = vmatprep.subr.mxu1 %v1112_v49  ;;  %v991_v49 = vld [vmem:[%s4045_s5 + $0x50] sm:$0xff] }
 0x146   : > { %1509 = vmatpush1.msra.mxu0 %v1043_v18  ;;  %1572 = vmatprep.mubr.f32.mxu0 %v977_v10  ;;  %v1231_v10 = vld [vmem:[%s4045_s5 + $0x7d0] sm:$0xff]  ;;  %v1188_v18 = vld [vmem:[%s4045_s5 + $0x678] sm:$0xff] }
 0x147   : > { %1510 = vmatprep.subr.mxu0 %v1040_v19  ;;  %1610 = vmatpush1.msra.mxu1 %v1111_v20  ;;  %v988_v19 = vld [vmem:[%s4045_s5 + $0x38] sm:$0xff]  ;;  %v1187_v20 = vld [vmem:[%s4045_s5 + $0x670] sm:$0xff] }
 0x148   : > { %1511 = vmatpush1.msra.mxu0 %v1039_v22  ;;  %1611 = vmatprep.subr.mxu1 %v1236_v23  ;;  %v987_v22 = vld [vmem:[%s4045_s5 + $0x30] sm:$0xff]  ;;  %v1184_v23 = vld [vmem:[%s4045_s5 + $0x658] sm:$0xff] }
 0x149   : > { %1512 = vmatprep.subr.mxu0 %v1036_v24  ;;  %1612 = vmatpush2.msra.mxu1 %v1235_v25  ;;  %v984_v24 = vld [vmem:[%s4045_s5 + $0x18] sm:$0xff]  ;;  %v1183_v25 = vld [vmem:[%s4045_s5 + $0x650] sm:$0xff] }
 0x14a   : > { %1513 = vmatpush1.msra.mxu0 %v1035_v26  ;;  %1613 = vmatprep.subr.mxu1 %v1232_v27  ;;  %v983_v26 = vld [vmem:[%s4045_s5 + $0x10] sm:$0xff]  ;;  %v1180_v27 = vld [vmem:[%s4045_s5 + $0x638] sm:$0xff] }
 0x14b   : > { %1514 = vmatprep.subr.mxu0 %v1032_v3  ;;  %1614 = vmatpush2.msra.mxu1 %v1231_v10  ;;  %v1108_v3 = vld [vmem:[%s4045_s5 + $0x3f8] sm:$0xff]  ;;  %v1179_v10 = vld [vmem:[%s4045_s5 + $0x630] sm:$0xff] }
 0x14c   : > { %1515 = vmatpush1.msra.mxu0 %v1031_v28  ;;  %1615 = vmatprep.subr.mxu1 %v1228_v29  ;;  %v1107_v28 = vld [vmem:[%s4045_s5 + $0x3f0] sm:$0xff]  ;;  %v1176_v29 = vld [vmem:[%s4045_s5 + $0x618] sm:$0xff] }
 0x14d   : > { %1516 = vmatprep.subr.mxu0 %v1028_v30  ;;  %1616 = vmatpush2.msra.mxu1 %v1227_v31  ;;  %v1104_v30 = vld [vmem:[%s4045_s5 + $0x3d8] sm:$0xff]  ;;  %v1175_v31 = vld [vmem:[%s4045_s5 + $0x610] sm:$0xff] }
 0x14e   : > { %1517 = vmatpush1.msra.mxu0 %v1027_v32  ;;  %1617 = vmatprep.subr.mxu1 %v1224_v33  ;;  %v1103_v32 = vld [vmem:[%s4045_s5 + $0x3d0] sm:$0xff]  ;;  %v1100_v33 = vld [vmem:[%s4045_s5 + $0x3b8] sm:$0xff] }
 0x14f   : > { %1518 = vmatprep.subr.mxu0 %v1024_v34  ;;  %1618 = vmatpush2.msra.mxu1 %v1223_v35  ;;  %v1099_v34 = vld [vmem:[%s4045_s5 + $0x3b0] sm:$0xff]  ;;  %v1096_v35 = vld [vmem:[%s4045_s5 + $0x398] sm:$0xff] }
 0x150   : > { %1519 = vmatpush1.msra.mxu0 %v1023_v36  ;;  %1619 = vmatprep.subr.mxu1 %v1220_v37  ;;  %v1095_v36 = vld [vmem:[%s4045_s5 + $0x390] sm:$0xff]  ;;  %v1092_v37 = vld [vmem:[%s4045_s5 + $0x378] sm:$0xff] }
 0x151   : > { %1520 = vmatprep.subr.mxu0 %v1020_v38  ;;  %1620 = vmatpush2.msra.mxu1 %v1219_v39  ;;  %v1756_v38 = vld [vmem:[%s4047_s7 + $0xf8] sm:$0xff]  ;;  %v1091_v39 = vld [vmem:[%s4045_s5 + $0x370] sm:$0xff] }
 0x152   : > { %1521 = vmatpush1.msra.mxu0 %v1019_v40  ;;  %1621 = vmatprep.subr.mxu1 %v1216_v41  ;;  %v1739_v40 = vld [vmem:[%s4047_s7 + $0x70] sm:$0xff]  ;;  %v1088_v41 = vld [vmem:[%s4045_s5 + $0x358] sm:$0xff] }
 0x153   : > { %1522 = vmatprep.subr.mxu0 %v1016_v42  ;;  %1622 = vmatpush2.msra.mxu1 %v1215_v43  ;;  %v1754_v42 = vld [vmem:[%s4047_s7 + $0xe8] sm:$0xff]  ;;  %v1087_v43 = vld [vmem:[%s4045_s5 + $0x350] sm:$0xff] }
 0x154   : > { %1523 = vmatpush1.msra.mxu0 %v1015_v44  ;;  %1623 = vmatprep.subr.mxu1 %v1212_v45  ;;  %v1738_v44 = vld [vmem:[%s4047_s7 + $0x68] sm:$0xff]  ;;  %v1084_v45 = vld [vmem:[%s4045_s5 + $0x338] sm:$0xff] }
 0x155   : > { %1524 = vmatprep.subr.mxu0 %v1012_v46  ;;  %1624 = vmatpush2.msra.mxu1 %v1211_v47  ;;  %v1753_v46 = vld [vmem:[%s4047_s7 + $0xe0] sm:$0xff]  ;;  %v1083_v47 = vld [vmem:[%s4045_s5 + $0x330] sm:$0xff] }
 0x156   : > { %1525 = vmatpush1.msra.mxu0 %v1011_v48  ;;  %1625 = vmatprep.subr.mxu1 %v1208_v50  ;;  %v1737_v48 = vld [vmem:[%s4047_s7 + $0x60] sm:$0xff]  ;;  %v1080_v50 = vld [vmem:[%s4045_s5 + $0x318] sm:$0xff] }
 0x157   : > { %1526 = vmatprep.subr.mxu0 %v1008_v51  ;;  %1626 = vmatpush2.msra.mxu1 %v1207_v53  ;;  %v1752_v51 = vld [vmem:[%s4047_s7 + $0xd8] sm:$0xff]  ;;  %v1079_v53 = vld [vmem:[%s4045_s5 + $0x310] sm:$0xff] }
 0x158   : > { %1527 = vmatpush1.msra.mxu0 %v1007_v57  ;;  %1627 = vmatprep.subr.mxu1 %v1204_v58  ;;  %v1736_v57 = vld [vmem:[%s4047_s7 + $0x58] sm:$0xff] }
 0x159   : > { %1528 = vmatprep.subr.mxu0 %v1004_v59  ;;  %1628 = vmatpush2.msra.mxu1 %v1203_v60  ;;  %v1076_v58 = vld [vmem:[%s4045_s5 + $0x2f8] sm:$0xff]  ;;  %v1751_v59 = vld [vmem:[%s4047_s7 + $0xd0] sm:$0xff] }
 0x15a   : > { %1529 = vmatpush1.msra.mxu0 %v1003_v61  ;;  %1629 = vmatprep.subr.mxu1 %v1200_v63  ;;  %v1075_v60 = vld [vmem:[%s4045_s5 + $0x2f0] sm:$0xff]  ;;  %v1072_v63 = vld [vmem:[%s4045_s5 + $0x2d8] sm:$0xff] }
 0x15b   : > { %1530 = vmatprep.subr.mxu0 %v1000_v1  ;;  %1630 = vmatpush2.msra.mxu1 %v1199_v4  ;;  %v1735_v61 = vld [vmem:[%s4047_s7 + $0x50] sm:$0xff]  ;;  %v1750_v1 = vld [vmem:[%s4047_s7 + $0xc8] sm:$0xff] }
 0x15c   : > { %1531 = vmatpush1.msra.mxu0 %v999_v7  ;;  %1631 = vmatprep.subr.mxu1 %v1196_v8  ;;  %v1071_v4 = vld [vmem:[%s4045_s5 + $0x2d0] sm:$0xff]  ;;  %v1734_v7 = vld [vmem:[%s4047_s7 + $0x48] sm:$0xff]  ;;  %v1068_v8 = vld [vmem:[%s4045_s5 + $0x2b8] sm:$0xff] }
 0x15d   : > { %1532 = vmatprep.subr.mxu0 %v996_v9  ;;  %1632 = vmatpush2.msra.mxu1 %v1195_v11  ;;  %v1749_v9 = vld [vmem:[%s4047_s7 + $0xc0] sm:$0xff]  ;;  %v1067_v11 = vld [vmem:[%s4045_s5 + $0x2b0] sm:$0xff] }
 0x15e   : > { %1533 = vmatpush1.msra.mxu0 %v995_v13  ;;  %1633 = vmatprep.subr.mxu1 %v1192_v14  ;;  %v1733_v13 = vld [vmem:[%s4047_s7 + $0x40] sm:$0xff]  ;;  %v1064_v14 = vld [vmem:[%s4045_s5 + $0x298] sm:$0xff] }
 0x15f   : > { %1534 = vmatprep.subr.mxu0 %v992_v55  ;;  %1634 = vmatpush2.msra.mxu1 %v1191_v6  ;;  %v1748_v55 = vld [vmem:[%s4047_s7 + $0xb8] sm:$0xff]  ;;  %v1063_v6 = vld [vmem:[%s4045_s5 + $0x290] sm:$0xff] }
 0x160   : > { %1535 = vmatpush1.msra.mxu0 %v991_v49  ;;  %1635 = vmatprep.subr.mxu1 %v1188_v18  ;;  %v1732_v49 = vld [vmem:[%s4047_s7 + $0x38] sm:$0xff] }
 0x161   : > { %1536 = vmatprep.subr.mxu0 %v988_v19  ;;  %1636 = vmatpush2.msra.mxu1 %v1187_v20  ;;  %v1060_v18 = vld [vmem:[%s4045_s5 + $0x278] sm:$0xff]  ;;  %v1747_v19 = vld [vmem:[%s4047_s7 + $0xb0] sm:$0xff] }
 0x162   : > { %1537 = vmatpush1.msra.mxu0 %v987_v22  ;;  %1637 = vmatprep.subr.mxu1 %v1184_v23  ;;  %v1059_v20 = vld [vmem:[%s4045_s5 + $0x270] sm:$0xff]  ;;  %v1056_v23 = vld [vmem:[%s4045_s5 + $0x258] sm:$0xff] }
 0x163   : > { %1538 = vmatprep.subr.mxu0 %v984_v24  ;;  %1638 = vmatpush2.msra.mxu1 %v1183_v25  ;;  %v1731_v22 = vld [vmem:[%s4047_s7 + $0x30] sm:$0xff]  ;;  %v1746_v24 = vld [vmem:[%s4047_s7 + $0xa8] sm:$0xff] }
 0x164   : > { %1539 = vmatpush1.msra.mxu0 %v983_v26  ;;  %1639 = vmatprep.subr.mxu1 %v1180_v27  ;;  %v1055_v25 = vld [vmem:[%s4045_s5 + $0x250] sm:$0xff]  ;;  %v1730_v26 = vld [vmem:[%s4047_s7 + $0x28] sm:$0xff]  ;;  %v1052_v27 = vld [vmem:[%s4045_s5 + $0x238] sm:$0xff] }
 0x165   : > { %1540 = vmatprep.subr.mxu0 %v1108_v3  ;;  %1640 = vmatpush2.msra.mxu1 %v1179_v10  ;;  %v1745_v3 = vld [vmem:[%s4047_s7 + $0xa0] sm:$0xff]  ;;  %v1051_v10 = vld [vmem:[%s4045_s5 + $0x230] sm:$0xff] }
 0x166   : > { %1541 = vmatpush2.msra.mxu0 %v1107_v28  ;;  %1641 = vmatprep.subr.mxu1 %v1176_v29  ;;  %v1729_v28 = vld [vmem:[%s4047_s7 + $0x20] sm:$0xff]  ;;  %v1048_v29 = vld [vmem:[%s4045_s5 + $0x218] sm:$0xff] }
 0x167   : > { %1542 = vmatprep.subr.mxu0 %v1104_v30  ;;  %1642 = vmatpush2.msra.mxu1 %v1175_v31  ;;  %v1047_v30 = vld [vmem:[%s4045_s5 + $0x210] sm:$0xff]  ;;  %v1268_v31 = vld [vmem:[%s4045_s5 + $0x8f8] sm:$0xff] }
 0x168   : > { %1543 = vmatpush2.msra.mxu0 %v1103_v32  ;;  %1644 = vmatmul.mubr.f32.vlgmr.msra.gmra.mxu1 %v978_v21  ;;  %v1755_v21 = vld [vmem:[%s4047_s7 + $0xf0] sm:$0xff] }
 0x169   : > { %1544 = vmatprep.subr.mxu0 %v1100_v33  ;;  %2078 = vmatprep.subr.mxu1 %v1756_v38  ;;  %v1267_v32 = vld [vmem:[%s4045_s5 + $0x8f0] sm:$0xff]  ;;  %v1264_v33 = vld [vmem:[%s4045_s5 + $0x8d8] sm:$0xff] }
 0x16a   : > { %1545 = vmatpush2.msra.mxu0 %v1099_v34  ;;  %2079 = vmatpush3.msra.mxu1 %v1740_v15  ;;  %v1263_v34 = vld [vmem:[%s4045_s5 + $0x8d0] sm:$0xff]  ;;  %v1256_v38 = vld [vmem:[%s4045_s5 + $0x898] sm:$0xff] }
 0x16b   : > { %1546 = vmatprep.subr.mxu0 %v1096_v35  ;;  %2080 = vmatprep.subr.mxu1 %v1755_v21  ;;  %v1744_v35 = vld [vmem:[%s4047_s7 + $0x98] sm:$0xff]  ;;  %v1255_v15 = vld [vmem:[%s4045_s5 + $0x890] sm:$0xff]  ;;  %v1742_v21 = vld [vmem:[%s4047_s7 + $0x88] sm:$0xff] }
 0x16c   : > { %1547 = vmatpush2.msra.mxu0 %v1095_v36  ;;  %2081 = vmatpush3.msra.mxu1 %v1739_v40  ;;  %v1260_v36 = vld [vmem:[%s4045_s5 + $0x8b8] sm:$0xff]  ;;  %v1726_v40 = vld [vmem:[%s4047_s7 + $0x8] sm:$0xff] }
 0x16d   : > { %1548 = vmatprep.subr.mxu0 %v1092_v37  ;;  %2082 = vmatprep.subr.mxu1 %v1754_v42  ;;  %v1743_v37 = vld [vmem:[%s4047_s7 + $0x90] sm:$0xff] }
 0x16e   : > { %1549 = vmatpush2.msra.mxu0 %v1091_v39  ;;  %2083 = vmatpush3.msra.mxu1 %v1738_v44  ;;  %v1252_v39 = vld [vmem:[%s4045_s5 + $0x878] sm:$0xff]  ;;  %v1251_v42 = vld [vmem:[%s4045_s5 + $0x870] sm:$0xff] }
 0x16f   : > { %1550 = vmatprep.subr.mxu0 %v1088_v41  ;;  %2084 = vmatprep.subr.mxu1 %v1753_v46  ;;  %v1741_v41 = vld [vmem:[%s4047_s7 + $0x80] sm:$0xff]  ;;  %v1248_v44 = vld [vmem:[%s4045_s5 + $0x858] sm:$0xff] }
 0x170   : > { %1551 = vmatpush2.msra.mxu0 %v1087_v43  ;;  %2085 = vmatpush3.msra.mxu1 %v1737_v48  ;;  %v1725_v43 = vld [vmem:[%s4047_s7] sm:$0xff]  ;;  %v1244_v46 = vld [vmem:[%s4045_s5 + $0x838] sm:$0xff] }
 0x171   : > { %1552 = vmatprep.subr.mxu0 %v1084_v45  ;;  %2086 = vmatprep.subr.mxu1 %v1752_v51  ;;  %v1247_v45 = vld [vmem:[%s4045_s5 + $0x850] sm:$0xff]  ;;  %v1240_v48 = vld [vmem:[%s4045_s5 + $0x818] sm:$0xff] }
 0x172   : > { %1553 = vmatpush2.msra.mxu0 %v1083_v47  ;;  %2087 = vmatpush3.msra.mxu1 %v1736_v57  ;;  %v1243_v47 = vld [vmem:[%s4045_s5 + $0x830] sm:$0xff]  ;;  %v1788_v51 = vld [vmem:[%s4047_s7 + $0x1f8] sm:$0xff] }
 0x173   : > { %1554 = vmatprep.subr.mxu0 %v1080_v50  ;;  %2088 = vmatprep.subr.mxu1 %v1751_v59  ;;  %v1239_v50 = vld [vmem:[%s4045_s5 + $0x810] sm:$0xff]  ;;  %v1785_v59 = vld [vmem:[%s4047_s7 + $0x1e0] sm:$0xff] }
 0x174   : > { %1555 = vmatpush2.msra.mxu0 %v1079_v53  ;;  %2089 = vmatpush3.msra.mxu1 %v1735_v61  ;;  %v1772_v53 = vld [vmem:[%s4047_s7 + $0x178] sm:$0xff]  ;;  %v1787_v57 = vld [vmem:[%s4047_s7 + $0x1f0] sm:$0xff] }
 0x175   : > { %1556 = vmatprep.subr.mxu0 %v1076_v58  ;;  %2090 = vmatprep.subr.mxu1 %v1750_v1  ;;  %v1771_v58 = vld [vmem:[%s4047_s7 + $0x170] sm:$0xff]  ;;  %v1784_v61 = vld [vmem:[%s4047_s7 + $0x1d8] sm:$0xff] }
 0x176   : > { %1557 = vmatpush2.msra.mxu0 %v1075_v60  ;;  %2091 = vmatpush3.msra.mxu1 %v1734_v7  ;;  %v1769_v60 = vld [vmem:[%s4047_s7 + $0x160] sm:$0xff]  ;;  %v1783_v1 = vld [vmem:[%s4047_s7 + $0x1d0] sm:$0xff]  ;;  %v1782_v7 = vld [vmem:[%s4047_s7 + $0x1c8] sm:$0xff] }
 0x177   : > { %1558 = vmatprep.subr.mxu0 %v1072_v63  ;;  %2092 = vmatprep.subr.mxu1 %v1749_v9  ;;  %v1768_v63 = vld [vmem:[%s4047_s7 + $0x158] sm:$0xff]  ;;  %v1781_v9 = vld [vmem:[%s4047_s7 + $0x1c0] sm:$0xff] }
 0x178   : > { %1559 = vmatpush2.msra.mxu0 %v1071_v4  ;;  %2093 = vmatpush3.msra.mxu1 %v1733_v13  ;;  %v1767_v4 = vld [vmem:[%s4047_s7 + $0x150] sm:$0xff]  ;;  %v1780_v13 = vld [vmem:[%s4047_s7 + $0x1b8] sm:$0xff] }
 0x179   : > { %1560 = vmatprep.subr.mxu0 %v1068_v8  ;;  %2094 = vmatprep.subr.mxu1 %v1748_v55  ;;  %v1766_v8 = vld [vmem:[%s4047_s7 + $0x148] sm:$0xff]  ;;  %v1779_v55 = vld [vmem:[%s4047_s7 + $0x1b0] sm:$0xff] }
 0x17a   : > { %1561 = vmatpush2.msra.mxu0 %v1067_v11  ;;  %2095 = vmatpush3.msra.mxu1 %v1732_v49  ;;  %v1765_v11 = vld [vmem:[%s4047_s7 + $0x140] sm:$0xff]  ;;  %v1778_v49 = vld [vmem:[%s4047_s7 + $0x1a8] sm:$0xff] }
 0x17b   : > { %1562 = vmatprep.subr.mxu0 %v1064_v14  ;;  %2096 = vmatprep.subr.mxu1 %v1747_v19  ;;  %v1764_v14 = vld [vmem:[%s4047_s7 + $0x138] sm:$0xff]  ;;  %v1777_v19 = vld [vmem:[%s4047_s7 + $0x1a0] sm:$0xff] }
 0x17c   : > { %1563 = vmatpush2.msra.mxu0 %v1063_v6  ;;  %2097 = vmatpush3.msra.mxu1 %v1731_v22  ;;  %v1763_v6 = vld [vmem:[%s4047_s7 + $0x130] sm:$0xff]  ;;  %v1776_v22 = vld [vmem:[%s4047_s7 + $0x198] sm:$0xff] }
 0x17d   : > { %1564 = vmatprep.subr.mxu0 %v1060_v18  ;;  %2098 = vmatprep.subr.mxu1 %v1746_v24  ;;  %v1762_v18 = vld [vmem:[%s4047_s7 + $0x128] sm:$0xff]  ;;  %v1775_v24 = vld [vmem:[%s4047_s7 + $0x190] sm:$0xff] }
 0x17e   : > { %1565 = vmatpush2.msra.mxu0 %v1059_v20  ;;  %2099 = vmatpush3.msra.mxu1 %v1730_v26  ;;  %v1761_v20 = vld [vmem:[%s4047_s7 + $0x120] sm:$0xff]  ;;  %v1774_v26 = vld [vmem:[%s4047_s7 + $0x188] sm:$0xff] }
 0x17f   : > { %1566 = vmatprep.subr.mxu0 %v1056_v23  ;;  %2100 = vmatprep.subr.mxu1 %v1745_v3  ;;  %v1760_v23 = vld [vmem:[%s4047_s7 + $0x118] sm:$0xff]  ;;  %v1773_v3 = vld [vmem:[%s4047_s7 + $0x180] sm:$0xff] }
 0x180   : > { %1567 = vmatpush2.msra.mxu0 %v1055_v25  ;;  %2101 = vmatpush3.msra.mxu1 %v1729_v28  ;;  %v1759_v25 = vld [vmem:[%s4047_s7 + $0x110] sm:$0xff]  ;;  %v1269_v28 = vld [vmem:[%s4046_s6] sm:$0xf] }
 0x181   : > { %1568 = vmatprep.subr.mxu0 %v1052_v27  ;;  %2102 = vmatprep.subr.mxu1 %v1744_v35  ;;  %v1758_v27 = vld [vmem:[%s4047_s7 + $0x108] sm:$0xff] }
 0x182   : > { %1569 = vmatpush2.msra.mxu0 %v1051_v10  ;;  %2103 = vmatpush3.msra.mxu1 %v1728_v2  ;;  %v1757_v10 = vld [vmem:[%s4047_s7 + $0x100] sm:$0xff] }
 0x183   : > { %1570 = vmatprep.subr.mxu0 %v1048_v29  ;;  %2104 = vmatprep.subr.mxu1 %v1743_v37 }
 0x184   : > { %1571 = vmatpush2.msra.mxu0 %v1047_v30  ;;  %v1274_v30 = vrot.slane %v1269_v28, %v948_v54  ;;  %v1282_v54 = vrot.slane %v1269_v28, %v956_v62 }
 0x185   : > { %1573 = vmatmul.mubr.f32.vlgmr.msra.gmra.mxu0 %v976_v12  ;;  %1666 = vmatprep.subr.mxu0 %v1268_v31  ;;  %v1259_v12 = vld [vmem:[%s4045_s5 + $0x8b0] sm:$0xff] }
 0x186   : > { %1667 = vmatpush1.msra.mxu0 %v1267_v32  ;;  %1714 = vmatprep.mubr.f32.mxu0 %v2256_v5  ;;  %v1727_v5 = vld [vmem:[%s4047_s7 + $0x10] sm:$0xff]  ;;  %v1278_v32 = vrot.slane %v1269_v28, %v952_v56  ;;  %v1286_v56 = vrot.slane %v1269_v28, %v960_v0 }
 0x187   : > { %1668 = vmatprep.subr.mxu0 %v1264_v33  ;;  %2105 = vmatpush3.msra.mxu1 %v1727_v5 }
 0x188   : > { %1669 = vmatpush1.msra.mxu0 %v1263_v34  ;;  %2106 = vmatprep.subr.mxu1 %v1742_v21 }
 0x189   : > { %1670 = vmatprep.subr.mxu0 %v1260_v36  ;;  %2107 = vmatpush3.msra.mxu1 %v1726_v40 }
 0x18a   : > { %1671 = vmatpush1.msra.mxu0 %v1259_v12  ;;  %2108 = vmatprep.subr.mxu1 %v1741_v41 }
 0x18b   : > { %1672 = vmatprep.subr.mxu0 %v1256_v38  ;;  %2109 = vmatpush3.msra.mxu1 %v1725_v43 }
 0x18c   : > { %1673 = vmatpush1.msra.mxu0 %v1255_v15 }
 0x18d   : > { %1674 = vmatprep.subr.mxu0 %v1252_v39 }
 0x18e   : > { %1675 = vmatpush1.msra.mxu0 %v1251_v42 }
 0x18f   : > { %1676 = vmatprep.subr.mxu0 %v1248_v44 }
 0x190   : > { %1677 = vmatpush1.msra.mxu0 %v1247_v45 }
 0x191   : > { %1678 = vmatprep.subr.mxu0 %v1244_v46 }
 0x192   : > { %1679 = vmatpush1.msra.mxu0 %v1243_v47 }
 0x193   : > { %1680 = vmatprep.subr.mxu0 %v1240_v48 }
 0x194   : > { %1681 = vmatpush1.msra.mxu0 %v1239_v50 }
 0x195   : > { %2034 = vmatmul.mubr.msk.f32.vlgmr.msra.gmra.mxu0 %vm1291_vm2, %v980_v17  ;;  %2113 = vmatprep.subr.mxu0 %v1788_v51  ;;  %v1770_v17 = vld [vmem:[%s4047_s7 + $0x168] sm:$0xff] }
 0x196   : > { %2114 = vmatpush3.msra.mxu0 %v1772_v53 }
 0x197   : > { %2115 = vmatprep.subr.mxu0 %v1787_v57 }
 0x198   : > { %2116 = vmatpush3.msra.mxu0 %v1771_v58 }
 0x199   : > { %2117 = vmatprep.subr.mxu0 %v1786_v16  ;;  %v2035_v16 = vld [vmem:[%s4048_s8] ss:$0 sm:$0xff] }
 0x19a   : > { %2118 = vmatpush3.msra.mxu0 %v1770_v17 }
 0x19b   : > { %2119 = vmatprep.subr.mxu0 %v1785_v59 }
 0x19c   : > { %2120 = vmatpush3.msra.mxu0 %v1769_v60 }
 0x19d   : > { %2121 = vmatprep.subr.mxu0 %v1784_v61 }
 0x19e   : > { %2122 = vmatpush3.msra.mxu0 %v1768_v63 }
 0x19f   : > { %2123 = vmatprep.subr.mxu0 %v1783_v1 }
 0x1a0   : > { %2124 = vmatpush3.msra.mxu0 %v1767_v4 }
 0x1a1   : > { %2125 = vmatprep.subr.mxu0 %v1782_v7 }
 0x1a2   : > { %2126 = vmatpush3.msra.mxu0 %v1766_v8 }
 0x1a3   : > { %2127 = vmatprep.subr.mxu0 %v1781_v9 }
 0x1a4   : > { %2128 = vmatpush3.msra.mxu0 %v1765_v11 }
 0x1a5   : > { %2129 = vmatprep.subr.mxu0 %v1780_v13 }
 0x1a6   : > { %2130 = vmatpush3.msra.mxu0 %v1764_v14 }
 0x1a7   : > { %2131 = vmatprep.subr.mxu0 %v1779_v55 }
 0x1a8   : > { %2132 = vmatpush3.msra.mxu0 %v1763_v6 }
 0x1a9   : > { %2133 = vmatprep.subr.mxu0 %v1778_v49 }
 0x1aa   : > { %2134 = vmatpush3.msra.mxu0 %v1762_v18 }
 0x1ab   : > { %2135 = vmatprep.subr.mxu0 %v1777_v19 }
 0x1ac   : > { %2136 = vmatpush3.msra.mxu0 %v1761_v20 }
 0x1ad   : > { %2137 = vmatprep.subr.mxu0 %v1776_v22 }
 0x1ae   : > { %2138 = vmatpush3.msra.mxu0 %v1760_v23 }
 0x1af   : > { %2139 = vmatprep.subr.mxu0 %v1775_v24 }
 0x1b0   : > { %2140 = vmatpush3.msra.mxu0 %v1759_v25 }
 0x1b1   : > { %2141 = vmatprep.subr.mxu0 %v1774_v26 }
 0x1b2   : > { %2142 = vmatpush3.msra.mxu0 %v1758_v27 }
 0x1b3   : > { %2143 = vmatprep.subr.mxu0 %v1773_v3 }
 0x1b4   : > { %2144 = vmatpush3.msra.mxu0 %v1757_v10 }
 0x1e2   : > { %v1361_v29 = vpop.f32.mrf.mxu0 }
 0x1e3   : > { %v1362_v34 = vadd.f32 %v1361_v29, %v1274_v30 }
 0x1e4   : > { %v1363_v33 = vpop.f32.mrf.mxu0 }
 0x1e5   : > { %v1364_v36 = vadd.f32 %v1363_v33, %v1278_v32 }
 0x1e7   : > { %v1432_v31 = vpop.f32.mrf.mxu1 }
 0x1e8   : > { %v1433_v2 = vadd.f32 %v1432_v31, %v1362_v34 }
 0x1e9   : > { %v1434_v35 = vpop.f32.mrf.mxu1 }
 0x1ea   : > { %v1435_v37 = vadd.f32 %v1434_v35, %v1364_v36 }
 0x205   : > { %v1503_v12 = vpop.f32.mrf.mxu0 }
 0x206   : > { %v1504_v38 = vadd.f32 %v1503_v12, %v1433_v2 }
 0x207   : > { %v1505_v5 = vpop.f32.mrf.mxu0 }
 0x208   : > { %v1506_v15 = vadd.f32 %v1505_v5, %v1435_v37  ;;  %v1721_v39 = vmax.f32 %v1504_v38, 0.0 }
 0x20a   : > { %v1722_v21 = vmax.f32 %v1506_v15, 0.0 }
 0x20c   : > { %1860 = vmatprep.mubr.f32.mxu1 %v1722_v21 }
 0x20d   : > { %1861 = vmatmul.mubr.f32.vlgmr.msra.gmra.mxu1 %v1721_v39 }
 0x228   : > { %v1645_v42 = vpop.f32.mrf.mxu1 }
 0x22a   : > { %v1647_v45 = vpop.f32.mrf.mxu1 }
 0x245   : > { %v1574_v40 = vpop.f32.mrf.mxu0 }
 0x246   : > { %v1575_v43 = vadd.f32 %v1574_v40, %v1282_v54 }
 0x247   : > { %v1576_v41 = vpop.f32.mrf.mxu0 }
 0x248   : > { %v1577_v44 = vadd.f32 %v1576_v41, %v1286_v56  ;;  %v1646_v46 = vadd.f32 %v1645_v42, %v1575_v43 }
 0x24a   : > { %v1648_v48 = vadd.f32 %v1647_v45, %v1577_v44 }
 0x255   : > { %v1716_v47 = vpop.f32.mrf.mxu0 }
 0x256   : > { %v1717_v50 = vadd.f32 %v1716_v47, %v1646_v46 }
 0x257   : > { %v1718_v51 = vpop.f32.mrf.mxu0 }
 0x258   : > { %v1719_v53 = vadd.f32 %v1718_v51, %v1648_v48  ;;  %v1723_v58 = vmax.f32 %v1717_v50, 0.0 }
 0x25a   : > { %v1724_v57 = vmax.f32 %v1719_v53, 0.0 }
 0x25c   : > { %1930 = vmatprep.mubr.f32.mxu0 %v1724_v57 }
 0x25d   : > { %1931 = vmatmul.mubr.f32.vlgmr.msra.gmra.mxu0 %v1723_v58 }
 0x2cd   : > { %v2110_v62 = vpop.f32.mrf.mxu1 }
 0x2cf   : > { %v2111_v52 = vpop.f32.mrf.mxu1 }
 0x2d0   : > { %v2112_v0 = vadd.f32 %v2111_v52, %v2110_v62 }
 0x2d2   : > { %v1863_v60 = vadd.f32 %v2112_v0, %v2035_v16 }
 0x31d   : > { %v2145_v17 = vpop.f32.mrf.mxu0 }
 0x31f   : > { %v2146_v59 = vpop.f32.mrf.mxu0 }
 0x320   : > { %v2147_v61 = vadd.f32 %v2146_v59, %v2145_v17 }
 0x322   : > { %v1933_v63 = vadd.f32 %v2147_v61, %v1863_v60 }
 0x324   : > { %1936 = vst [vmem:[%s338_s27] sm:$0xff] %v1933_v63 }
 0x325   : > { %2207 = shalt.err (!%p2204_p3)
}
 0x326   : > { %s2208_s23 = scalar_lea.hbm %s1949_s14, 128  ;;  %s2212_s27 = scalar_lea.hbm %s4049_s9, 256 }
 0x327   : > { %p2209_p4 = scmp.ne.s32.totalorder %s1949_s14, %s2208_s23  ;;  %p2213_p9 = scmp.lt.s32.totalorder %s1949_s14, %s4049_s9 }
 0x328   : > { %p2214_p10 = scmp.lt.s32.totalorder %s2212_s27, %s2208_s23 }
 0x329   : > { %p2210_p7 = pnand %p2209_p4, %p2347_p5 }
 0x32a   : > { %p2215_p11 = por %p2214_p10, %p2213_p9 }
 0x32b   : > { %p2211_p8 = pneg %p2210_p7 }
 0x32d   : > { %p2216_p12 = pnand %p2215_p11, %p2211_p8 }
 0x32f   : > { %2219 = shalt.err (!%p2216_p12)
}
 0x330   : > { %2153 = dma.vmem_to_hbm [thread:$0]  (%p2347_p5), %s1952_s29, 128, %s1949_s14, %s1938_s21  }
 0x331 PF: > { %p2159_p13 = scmp.ge.s32.totalorder %s2254_s12, 2  ;;  %s1963_s22 = sand.u32 1, %s2242_s30  }
 0x332   : > { %s1964_s25 = scalar_lea.sflag [#allocation3], %s1963_s22 }
 0x333   : > { %p2156_p0 = pnand %p2159_p13, %p2351_p6 }
 0x335   : > { %p2157_p1 = pneg %p2156_p0 }
 0x337   : > { %2237 = dma.done.wait (%p2157_p1), %s1964_s25, 128  }
 0x338   : > { %2239 = vsyncadd (%p2157_p1), %s1964_s25, 4294967168  ;;  %p19_p2 = scmp.ge.s32.totalorder %s2334_s15, 4   ;;  %s4052_s30 = smov %s2246_s10 }
 0x339   : > { %s4053_s10 = smov %s2250_s11  ;;  %s4054_s11 = smov %s2345_s18 }
 0x33a   : > { %s4055_s12 = smov %s2334_s15  ;;  %21 = sbr.rel (!%p19_p2) target bundleno = 3 (0x3), region = 94 }
 0x33f   :  { %1969 = vsyncpa [#allocation3], 1 }
 0x340   :  { %1971 = vsyncpa [#allocation3 + $0x1], 1 }

</bundles_post_ra>
